<compile_context>
chip_gen: v7x
topology: tpu7x:2x2x1
jax: 0.10.0
libtpu: 0.0.40
codegen_flags: <defaults>
</compile_context>

<pallas_src>
import jax
import jax.numpy as jnp
from jax.experimental import pallas as pl
from jax.experimental.pallas import tpu as pltpu


_LANE = 128
_SUBLANE = 8
_MIN_PIXELS_FOR_KERNEL = 16384          # below this (or ragged lanes) use the pure-JAX path
_ACC_BYTES = _SUBLANE * _LANE * 4       # single-vreg f32 accumulator


def _ce_sum_kernel(logits_ref, labels_ref, out_ref, acc_ref):
    """Accumulate per-pixel CE into a one-vreg scratch; flush a per-(image,chunk) scalar.

    logits_ref : (1, C, tr, L)   model logits in native dtype (f32 or bf16)
    labels_ref : (1, tr, L)      integer class ids (native narrow dtype)
    out_ref    : (1, 1, 1) f32   partial sum, written only at the last row tile
    acc_ref    : (ar, L)  f32    VMEM accumulator (ar == 8 when tr % 8 == 0)
    """
    r = pl.program_id(2)

    @pl.when(r == 0)
    def _init():
        acc_ref[...] = jnp.zeros_like(acc_ref)

    num_classes = logits_ref.shape[1]
    labels = labels_ref[0].astype(jnp.int32)             # widen once, in-register

    # Running max over channels in the native dtype (exact for max); one cast afterwards.
    m = logits_ref[0, 0]
    for ci in range(1, num_classes):
        m = jnp.maximum(m, logits_ref[0, ci])
    m = m.astype(jnp.float32)

    # Single fused second pass: exp-sum and label-gather on the shifted logits (C exps total).
    ssum = jnp.zeros_like(m)
    picked = jnp.zeros_like(m)
    for ci in range(num_classes):
        sh = logits_ref[0, ci].astype(jnp.float32) - m
        ssum = ssum + jnp.exp(sh)
        picked = picked + jnp.where(labels == ci, sh, 0.0)

    # per-pixel loss = logsumexp(x) - x[label] = log(sum exp(x - m)) - (x[label] - m)
    loss = jnp.log(ssum) - picked                         # (tr, L) f32

    tr, lanes = loss.shape
    ar = acc_ref.shape[0]
    if tr == ar:
        acc_ref[...] += loss
    else:
        # Sublane-aligned fold into a single vreg: pure VPU adds, no XLU, no big VMEM scratch.
        acc_ref[...] += loss.reshape(tr // ar, ar, lanes).sum(axis=0)

    @pl.when(r == pl.num_programs(2) - 1)
    def _flush():
        out_ref[...] = jnp.full((1, 1, 1), jnp.sum(acc_ref[...]), dtype=out_ref.dtype)


def _vmem_params():
    """(per-step working-set budget, vmem_limit cap) by TPU generation."""
    try:
        kind = jax.devices()[0].device_kind.lower()
    except Exception:
        kind = ""
    if "v5 lite" in kind or "v5e" in kind or "v5litepod" in kind:
        return 10 << 20, 100 << 20
    if "v7" in kind:
        return 24 << 20, 56 << 20       # 64 MiB physical VMEM per TC on v7x
    if "v6" in kind:
        return 28 << 20, 100 << 20
    return 16 << 20, 48 << 20           # unknown chip: conservative


def _pick_row_tile(rows, lanes, channels, logit_isz, label_isz, budget_bytes):
    """Largest row tile whose full per-step VMEM footprint (double-buffered logits + labels
    blocks + the accumulator vreg) fits `budget_bytes`.  The tile must divide `rows` and be a
    multiple of the sublane packing (8/16/32 for 4/2/1-byte dtypes), or be the full extent."""
    per_row = 2 * (channels * logit_isz + label_isz) * lanes      # x2: double buffering

    def fits(tr):
        return per_row * tr + _ACC_BYTES <= budget_bytes

    if fits(rows):
        return rows
    align = max(32 // logit_isz, 32 // label_isz, _SUBLANE)
    best = None
    for tr in range(align, rows, align):
        if rows % tr == 0 and fits(tr):
            best = tr
    if best is None:
        for tr in range(_SUBLANE, rows, _SUBLANE):
            if rows % tr == 0 and fits(tr):
                best = tr
    return best if best is not None else rows                     # full-dim is always legal


def _ce_reference(logits_nchw, labels_nhw):
    """Pure-JAX CE (used as the fallback for tiny heads and as the correctness reference)."""
    n, c, h, w = logits_nchw.shape
    logits = jnp.transpose(logits_nchw, (0, 2, 3, 1)).reshape(-1, c).astype(jnp.float32)
    labels = labels_nhw.reshape(-1).astype(jnp.int32)
    logz = jax.nn.logsumexp(logits, axis=-1)
    picked = jnp.take_along_axis(logits, labels[:, None], axis=-1)[:, 0]
    return jnp.mean(logz - picked)


def cross_entropy_loss(logits_nchw, labels_nhw, *, vmem_budget_bytes=None,
                       min_pixels_for_kernel=_MIN_PIXELS_FOR_KERNEL):
    """Mean softmax cross-entropy over all pixels (== torch.nn.CrossEntropyLoss default)."""
    n, c, h, w = logits_nchw.shape
    p = h * w

    # Tiny / ragged heads: negligible work, the Pallas fixed overheads dominate -> pure JAX.
    if p % _LANE != 0 or p < min_pixels_for_kernel:
        return _ce_reference(logits_nchw, labels_nhw)

    rows, lanes = p // _LANE, _LANE
    # Metadata-only reshapes (no transpose, no HBM copy): pixels on (sublane, lane) axes.
    logits = logits_nchw.reshape(n, c, rows, lanes)               # native dtype (f32 or bf16)
    labels = labels_nhw.reshape(n, rows, lanes)                   # native narrow integer dtype
    if not jnp.issubdtype(labels.dtype, jnp.integer):
        labels = labels.astype(jnp.int32)

    # v7x has 2 TCs per chip; only "parallel" grid axes are sharded across them.  When n == 1,
    # split the row axis into 2 parallel chunks (index-map arithmetic only) so both cores work.
    n_chunks = 2 if (n == 1 and rows % (2 * _SUBLANE) == 0) else 1
    rows_per_chunk = rows // n_chunks

    budget, vmem_cap = _vmem_params()
    if vmem_budget_bytes is not None:
        budget = vmem_budget_bytes
    tr = _pick_row_tile(rows_per_chunk, lanes, c,
                        logits.dtype.itemsize, labels.dtype.itemsize, budget)
    tiles_per_chunk = rows_per_chunk // tr
    grid = (n, n_chunks, tiles_per_chunk)

    acc_rows = _SUBLANE if tr % _SUBLANE == 0 else tr
    footprint = (2 * (c * logits.dtype.itemsize + labels.dtype.itemsize) * tr * lanes
                 + acc_rows * lanes * 4)
    vmem_limit = int(min(vmem_cap, max(32 << 20, footprint + (4 << 20))))

    partials = pl.pallas_call(
        _ce_sum_kernel,
        out_shape=jax.ShapeDtypeStruct((n * n_chunks, 1, 1), jnp.float32),
        grid_spec=pltpu.PrefetchScalarGridSpec(
            num_scalar_prefetch=0,
            grid=grid,
            in_specs=[
                pl.BlockSpec((1, c, tr, lanes),
                             lambda i, ch, r: (i, 0, ch * tiles_per_chunk + r, 0)),
                pl.BlockSpec((1, tr, lanes),
                             lambda i, ch, r: (i, ch * tiles_per_chunk + r, 0)),
            ],
            out_specs=pl.BlockSpec((1, 1, 1),
                                   lambda i, ch, r: (i * n_chunks + ch, 0, 0)),
            scratch_shapes=[pltpu.VMEM((acc_rows, lanes), jnp.float32)],
        ),
        compiler_params=pltpu.CompilerParams(
            dimension_semantics=("parallel", "parallel", "arbitrary"),
            vmem_limit_bytes=vmem_limit),
    )(logits, labels)

    return jnp.sum(partials) / (n * p)


class MultipleOutputLoss2:
    """Faithful port of the PyTorch module's forward semantics."""

    def __init__(self, loss, weight_factors=None):
        self.weight_factors = weight_factors
        self.loss = loss

    def __call__(self, x, y):
        assert isinstance(x, (tuple, list)), 'x must be either tuple or list'
        assert isinstance(y, (tuple, list)), 'y must be either tuple or list'
        if self.weight_factors is None:
            weights = [1] * len(x)
        else:
            weights = self.weight_factors
        l = weights[0] * self.loss(x[0], y[0])
        for i in range(1, len(x)):
            if weights[i] != 0:
                l += weights[i] * self.loss(x[i], y[i])
        return l


if __name__ == "__main__":
    key = jax.random.PRNGKey(0)
    batch, channels = 2, 4
    spatials = [128, 64, 32]     # deep-supervision scales; head 0 runs through the Pallas kernel

    xs, ys = [], []
    for s in spatials:
        key, k1, k2 = jax.random.split(key, 3)
        xs.append(jax.random.normal(k1, (batch, channels, s, s), dtype=jnp.float32))
        # narrow (uint8) labels: ~4x less HBM traffic than int32, no wrapper-side cast pass
        ys.append(jax.random.randint(k2, (batch, s, s), 0, channels,
                                     dtype=jnp.int32).astype(jnp.uint8))

    # nnUNet-style deep-supervision weights: 1/2^i, normalized
    raw = [1.0, 0.5, 0.25]
    weight_factors = [r / sum(raw) for r in raw]

    loss_module = MultipleOutputLoss2(cross_entropy_loss, weight_factors)
    out = jax.block_until_ready(loss_module(xs, ys))

    ref_module = MultipleOutputLoss2(_ce_reference, weight_factors)
    ref = jax.block_until_ready(ref_module(xs, ys))
    assert jnp.allclose(out, ref, rtol=1e-5, atol=1e-5), (out, ref)

    # (a) batch=1 -> row-chunk split (v7x 2-TC path); tiny forced VMEM budget -> several row
    #     tiles per chunk, exercising the carried single-vreg accumulator.
    key, k1, k2 = jax.random.split(key, 3)
    x1 = jax.random.normal(k1, (1, channels, 128, 128), dtype=jnp.float32)
    y1 = jax.random.randint(k2, (1, 128, 128), 0, channels, dtype=jnp.int32)
    o1 = jax.block_until_ready(cross_entropy_loss(x1, y1, vmem_budget_bytes=128 << 10))
    r1 = jax.block_until_ready(_ce_reference(x1, y1))
    assert jnp.allclose(o1, r1, rtol=1e-5, atol=1e-5), (o1, r1)

    # (b) bf16 logits: native-dtype DMA + in-register bf16 running max.
    xb = xs[0].astype(jnp.bfloat16)
    ob = jax.block_until_ready(cross_entropy_loss(xb, ys[0]))
    rb = jax.block_until_ready(_ce_reference(xb, ys[0]))
    assert jnp.allclose(ob, rb, rtol=5e-5, atol=5e-5), (ob, rb)

    print("KERNEL_OK")
</pallas_src>

<mosaic_0001>
module attributes {stable_mosaic.version = 11 : i64} {
  func.func @_ce_sum_kernel(%arg0: i32, %arg1: i32, %arg2: i32, %arg3: memref<1x4x128x128xf32, #tpu.memory_space<vmem>>, %arg4: memref<1x128x128xi8, #tpu.memory_space<vmem>>, %arg5: memref<1x1x1xf32, #tpu.memory_space<vmem>>, %arg6: memref<8x128xf32, #tpu.memory_space<vmem>>) attributes {dimension_semantics = [#tpu.dimension_semantics<parallel>, #tpu.dimension_semantics<parallel>, #tpu.dimension_semantics<arbitrary>], iteration_bounds = array<i64: 2, 1, 1>, scalar_prefetch = 0 : i64, scratch_operands = 1 : i64, tpu.core_type = #tpu.core_type<tc>, window_params = [{transform_indices = @transform_0, window_bounds = array<i64: 1, 4, 128, 128>}, {transform_indices = @transform_1, window_bounds = array<i64: 1, 128, 128>}, {transform_indices = @transform_2, window_bounds = array<i64: 1, 1, 1>}]} {
    %c0_i32 = arith.constant 0 : i32
    %0 = arith.cmpi eq, %arg2, %c0_i32 : i32
    %1 = arith.extui %0 : i1 to i32
    %c0_i32_0 = arith.constant 0 : i32
    %2 = arith.cmpi ne, %1, %c0_i32_0 : i32
    scf.if %2 {
      %cst_45 = arith.constant 0.000000e+00 : f32
      %69 = vector.broadcast %cst_45 : f32 to vector<8x128xf32>
      %c0_46 = arith.constant 0 : index
      %c0_47 = arith.constant 0 : index
      %70 = vector.load %arg6[%c0_46, %c0_47] : memref<8x128xf32, #tpu.memory_space<vmem>>, vector<8x128xf32>
      tpu.vector_store %arg6[%c0_46, %c0_47], %69 {strides = array<i32>} : memref<8x128xf32, #tpu.memory_space<vmem>>, vector<8x128xf32>,
    } else {
    }
    %c0 = arith.constant 0 : index
    %c0_1 = arith.constant 0 : index
    %c0_2 = arith.constant 0 : index
    %3 = vector.load %arg4[%c0, %c0_1, %c0_2] : memref<1x128x128xi8, #tpu.memory_space<vmem>>, vector<1x128x128xi8>
    %4 = vector.shape_cast %3 : vector<1x128x128xi8> to vector<128x128xi8>
    %5 = arith.extui %4 : vector<128x128xi8> to vector<128x128xi32>
    %c0_3 = arith.constant 0 : index
    %c0_4 = arith.constant 0 : index
    %c0_5 = arith.constant 0 : index
    %c0_6 = arith.constant 0 : index
    %6 = vector.load %arg3[%c0_3, %c0_4, %c0_5, %c0_6] : memref<1x4x128x128xf32, #tpu.memory_space<vmem>>, vector<1x1x128x128xf32>
    %7 = vector.shape_cast %6 : vector<1x1x128x128xf32> to vector<128x128xf32>
    %c0_7 = arith.constant 0 : index
    %c1 = arith.constant 1 : index
    %c0_8 = arith.constant 0 : index
    %c0_9 = arith.constant 0 : index
    %8 = vector.load %arg3[%c0_7, %c1, %c0_8, %c0_9] : memref<1x4x128x128xf32, #tpu.memory_space<vmem>>, vector<1x1x128x128xf32>
    %9 = vector.shape_cast %8 : vector<1x1x128x128xf32> to vector<128x128xf32>
    %10 = arith.maximumf %7, %9 : vector<128x128xf32>
    %c0_10 = arith.constant 0 : index
    %c2 = arith.constant 2 : index
    %c0_11 = arith.constant 0 : index
    %c0_12 = arith.constant 0 : index
    %11 = vector.load %arg3[%c0_10, %c2, %c0_11, %c0_12] : memref<1x4x128x128xf32, #tpu.memory_space<vmem>>, vector<1x1x128x128xf32>
    %12 = vector.shape_cast %11 : vector<1x1x128x128xf32> to vector<128x128xf32>
    %13 = arith.maximumf %10, %12 : vector<128x128xf32>
    %c0_13 = arith.constant 0 : index
    %c3 = arith.constant 3 : index
    %c0_14 = arith.constant 0 : index
    %c0_15 = arith.constant 0 : index
    %14 = vector.load %arg3[%c0_13, %c3, %c0_14, %c0_15] : memref<1x4x128x128xf32, #tpu.memory_space<vmem>>, vector<1x1x128x128xf32>
    %15 = vector.shape_cast %14 : vector<1x1x128x128xf32> to vector<128x128xf32>
    %16 = arith.maximumf %13, %15 : vector<128x128xf32>
    %cst = arith.constant 0.000000e+00 : f32
    %17 = vector.broadcast %cst : f32 to vector<128x128xf32>
    %cst_16 = arith.constant 0.000000e+00 : f32
    %18 = vector.broadcast %cst_16 : f32 to vector<128x128xf32>
    %c0_17 = arith.constant 0 : index
    %c0_18 = arith.constant 0 : index
    %c0_19 = arith.constant 0 : index
    %c0_20 = arith.constant 0 : index
    %19 = vector.load %arg3[%c0_17, %c0_18, %c0_19, %c0_20] : memref<1x4x128x128xf32, #tpu.memory_space<vmem>>, vector<1x1x128x128xf32>
    %20 = vector.shape_cast %19 : vector<1x1x128x128xf32> to vector<128x128xf32>
    %21 = arith.subf %20, %16 : vector<128x128xf32>
    %22 = math.exp %21 : vector<128x128xf32>
    %23 = arith.addf %17, %22 : vector<128x128xf32>
    %c0_i32_21 = arith.constant 0 : i32
    %24 = vector.broadcast %c0_i32_21 : i32 to vector<128x128xi32>
    %25 = arith.cmpi eq, %5, %24 : vector<128x128xi32>
    %cst_22 = arith.constant 0.000000e+00 : f32
    %26 = vector.broadcast %cst_22 : f32 to vector<128x128xf32>
    %27 = arith.select %25, %21, %26 : vector<128x128xi1>, vector<128x128xf32>
    %28 = arith.addf %18, %27 : vector<128x128xf32>
    %c0_23 = arith.constant 0 : index
    %c1_24 = arith.constant 1 : index
    %c0_25 = arith.constant 0 : index
    %c0_26 = arith.constant 0 : index
    %29 = vector.load %arg3[%c0_23, %c1_24, %c0_25, %c0_26] : memref<1x4x128x128xf32, #tpu.memory_space<vmem>>, vector<1x1x128x128xf32>
    %30 = vector.shape_cast %29 : vector<1x1x128x128xf32> to vector<128x128xf32>
    %31 = arith.subf %30, %16 : vector<128x128xf32>
    %32 = math.exp %31 : vector<128x128xf32>
    %33 = arith.addf %23, %32 : vector<128x128xf32>
    %c1_i32 = arith.constant 1 : i32
    %34 = vector.broadcast %c1_i32 : i32 to vector<128x128xi32>
    %35 = arith.cmpi eq, %5, %34 : vector<128x128xi32>
    %cst_27 = arith.constant 0.000000e+00 : f32
    %36 = vector.broadcast %cst_27 : f32 to vector<128x128xf32>
    %37 = arith.select %35, %31, %36 : vector<128x128xi1>, vector<128x128xf32>
    %38 = arith.addf %28, %37 : vector<128x128xf32>
    %c0_28 = arith.constant 0 : index
    %c2_29 = arith.constant 2 : index
    %c0_30 = arith.constant 0 : index
    %c0_31 = arith.constant 0 : index
    %39 = vector.load %arg3[%c0_28, %c2_29, %c0_30, %c0_31] : memref<1x4x128x128xf32, #tpu.memory_space<vmem>>, vector<1x1x128x128xf32>
    %40 = vector.shape_cast %39 : vector<1x1x128x128xf32> to vector<128x128xf32>
    %41 = arith.subf %40, %16 : vector<128x128xf32>
    %42 = math.exp %41 : vector<128x128xf32>
    %43 = arith.addf %33, %42 : vector<128x128xf32>
    %c2_i32 = arith.constant 2 : i32
    %44 = vector.broadcast %c2_i32 : i32 to vector<128x128xi32>
    %45 = arith.cmpi eq, %5, %44 : vector<128x128xi32>
    %cst_32 = arith.constant 0.000000e+00 : f32
    %46 = vector.broadcast %cst_32 : f32 to vector<128x128xf32>
    %47 = arith.select %45, %41, %46 : vector<128x128xi1>, vector<128x128xf32>
    %48 = arith.addf %38, %47 : vector<128x128xf32>
    %c0_33 = arith.constant 0 : index
    %c3_34 = arith.constant 3 : index
    %c0_35 = arith.constant 0 : index
    %c0_36 = arith.constant 0 : index
    %49 = vector.load %arg3[%c0_33, %c3_34, %c0_35, %c0_36] : memref<1x4x128x128xf32, #tpu.memory_space<vmem>>, vector<1x1x128x128xf32>
    %50 = vector.shape_cast %49 : vector<1x1x128x128xf32> to vector<128x128xf32>
    %51 = arith.subf %50, %16 : vector<128x128xf32>
    %52 = math.exp %51 : vector<128x128xf32>
    %53 = arith.addf %43, %52 : vector<128x128xf32>
    %c3_i32 = arith.constant 3 : i32
    %54 = vector.broadcast %c3_i32 : i32 to vector<128x128xi32>
    %55 = arith.cmpi eq, %5, %54 : vector<128x128xi32>
    %cst_37 = arith.constant 0.000000e+00 : f32
    %56 = vector.broadcast %cst_37 : f32 to vector<128x128xf32>
    %57 = arith.select %55, %51, %56 : vector<128x128xi1>, vector<128x128xf32>
    %58 = arith.addf %48, %57 : vector<128x128xf32>
    %59 = math.log %53 : vector<128x128xf32>
    %60 = arith.subf %59, %58 : vector<128x128xf32>
    %c0_38 = arith.constant 0 : index
    %c0_39 = arith.constant 0 : index
    %61 = vector.load %arg6[%c0_38, %c0_39] : memref<8x128xf32, #tpu.memory_space<vmem>>, vector<8x128xf32>
    %62 = vector.shape_cast %60 : vector<128x128xf32> to vector<16x8x128xf32>
    %cst_40 = arith.constant dense<0.000000e+00> : vector<8x128xf32>
    %63 = vector.multi_reduction <add>, %62, %cst_40 [0] : vector<16x8x128xf32> to vector<8x128xf32>
    %64 = arith.addf %61, %63 : vector<8x128xf32>
    %c0_41 = arith.constant 0 : index
    %c0_42 = arith.constant 0 : index
    %65 = vector.load %arg6[%c0_41, %c0_42] : memref<8x128xf32, #tpu.memory_space<vmem>>, vector<8x128xf32>
    tpu.vector_store %arg6[%c0_41, %c0_42], %64 {strides = array<i32>} : memref<8x128xf32, #tpu.memory_space<vmem>>, vector<8x128xf32>,
    %c0_i32_43 = arith.constant 0 : i32
    %66 = arith.cmpi eq, %arg2, %c0_i32_43 : i32
    %67 = arith.extui %66 : i1 to i32
    %c0_i32_44 = arith.constant 0 : i32
    %68 = arith.cmpi ne, %67, %c0_i32_44 : i32
    scf.if %68 {
      %c0_45 = arith.constant 0 : index
      %c0_46 = arith.constant 0 : index
      %69 = vector.load %arg6[%c0_45, %c0_46] : memref<8x128xf32, #tpu.memory_space<vmem>>, vector<8x128xf32>
      %70 = vector.shape_cast %69 : vector<8x128xf32> to vector<1x8x128xf32>
      %cst_47 = arith.constant dense<0.000000e+00> : vector<1xf32>
      %71 = vector.multi_reduction <add>, %70, %cst_47 [1, 2] : vector<1x8x128xf32> to vector<1xf32>
      %72 = vector.shape_cast %71 : vector<1xf32> to vector<1x1x1xf32>
      %73 = vector.extract %72[0, 0, 0] : f32 from vector<1x1x1xf32>
      %74 = vector.broadcast %73 : f32 to vector<1x1x1xf32>
      %c0_48 = arith.constant 0 : index
      %c0_49 = arith.constant 0 : index
      %c0_50 = arith.constant 0 : index
      %75 = vector.load %arg5[%c0_48, %c0_49, %c0_50] : memref<1x1x1xf32, #tpu.memory_space<vmem>>, vector<1x1x1xf32>
      tpu.vector_store %arg5[%c0_48, %c0_49, %c0_50], %74 {strides = array<i32>} : memref<1x1x1xf32, #tpu.memory_space<vmem>>, vector<1x1x1xf32>,
    } else {
    }
    return
  }
  func.func @transform_0(%arg0: i32, %arg1: i32, %arg2: i32) -> (i32, i32, i32, i32) {
    %c1_i32 = arith.constant 1 : i32
    %0 = arith.muli %arg1, %c1_i32 : i32
    %1 = arith.addi %0, %arg2 : i32
    %c0_i32 = arith.constant 0 : i32
    %c0_i32_0 = arith.constant 0 : i32
    %c0_i32_1 = arith.constant 0 : i32
    return %arg0, %c0_i32, %1, %c0_i32_0 : i32, i32, i32, i32
  }
  func.func @transform_1(%arg0: i32, %arg1: i32, %arg2: i32) -> (i32, i32, i32) {
    %c1_i32 = arith.constant 1 : i32
    %0 = arith.muli %arg1, %c1_i32 : i32
    %1 = arith.addi %0, %arg2 : i32
    %c0_i32 = arith.constant 0 : i32
    %c0_i32_0 = arith.constant 0 : i32
    return %arg0, %1, %c0_i32 : i32, i32, i32
  }
  func.func @transform_2(%arg0: i32, %arg1: i32, %arg2: i32) -> (i32, i32, i32) {
    %c1_i32 = arith.constant 1 : i32
    %0 = arith.muli %arg0, %c1_i32 : i32
    %1 = arith.addi %0, %arg1 : i32
    %c0_i32 = arith.constant 0 : i32
    %c0_i32_0 = arith.constant 0 : i32
    %c0_i32_1 = arith.constant 0 : i32
    return %1, %c0_i32, %c0_i32_0 : i32, i32, i32
  }
}

</mosaic_0001>

<bundles_post_ra>
// kernel: tpu_custom_call.1
= control target key start
LH: loop header
LB: loop body
LE: loop exit
PB: predicated region body
PF: predicated region fallthrough
CT: control target
= control target key end

     0   :  { %7 = vsyncpa [#allocation4], 0  ;;  %s2808_s0 = inlined_call_operand.hbm [shape: f32[2,4,128,128], index: 0, kind: input, shape index: {}]   ;;  %s2809_s1 = inlined_call_operand.hbm [shape: u8[2,128,128], index: 1, kind: input, shape index: {}]   ;;  %s2810_s2 = inlined_call_operand.vmem [shape: f32[2,1,1], index: 2, kind: output, shape index: {}]  }
   0x1   :  { %9 = vsyncpa [#allocation4 + $0x1], 0 }
   0x2   :  { %10 = vsyncpa [#allocation6], 0 }
   0x3   :  { %12 = vsyncpa [#allocation6 + $0x1], 0  ;;  %s1456_s9 = smov 0   ;;  %s1458_s10 = smov 0  }
   0x4   :  { %s1460_s11 = smov 0   ;;  %s1462_s12 = smov 0  }
   0x5   :  { %s1464_s13 = smov 0   ;;  %s1466_s14 = smov 0  }
   0x6 LB: > { %s1032_s15 = sadd.s32 4294967295, %s1435_s14   ;;  %s37_s16 = sadd.s32 1, %s1431_s13  ;;  %s1435_s14 = sphi %s1466_s14, %s18_s14   ;;  %s1431_s13 = sphi %s1464_s13, %s3182_s13   ;;  %s1427_s12 = sphi %s1462_s12, %s3181_s12   ;;  %s1423_s11 = sphi %s1460_s11, %s3180_s11   ;;  %s1419_s10 = sphi %s1458_s10, %s3179_s10   ;;  %s1415_s9 = sphi %s1456_s9, %s3178_s9  }
   0x7   : > { %p39_p0 = scmp.ge.s32.totalorder %s37_s16, 2  ;;  %s48_s17 = sadd.s32 1, %s1423_s11 }
   0x8   : > { %p55_p1 = scmp.ne.s32.totalorder %s1423_s11, %s1419_s10  ;;  %p56_p2 = scmp.eq.s32.totalorder %s1435_s14, 0 }
   0x9   : > { %s3184_s16 = smov (%p39_p0, %s37_s16), 0  ;;  %p61_p4 = scmp.ne.s32.totalorder %s1419_s10, %s1415_s9 }
   0xa   : > { %p1492_p3 = por %p56_p2, %p55_p1  ;;  %s43_s19 = ssub.s32 %s1431_s13, %s3184_s16 }
   0xb   : > { %p62_p5 = scmp.eq.s32.totalorder %s1032_s15, 0  ;;  %p46_p6 = scmp.eq.s32.totalorder %s43_s19, 0 }
   0xc   : > { %p1110_p8 = scmp.lt.s32.totalorder %s1435_s14, 2  ;;  %s1508_s22 = sand.u32 1, %s1423_s11  }
   0xd   : > { %p1499_p7 = por %p62_p5, %p61_p4  ;;  %s1095_s23 = sshll.u32 %s1431_s13, 13 }
   0xe   : > { %s1505_s21 = scalar_select %p46_p6, %s1423_s11, %s48_s17  }
   0xf   : > { %s2917_s20 = scalar_select %p1499_p7, 1, 0 }
  0x10   : > { %s1036_s24 = sshll.u32 %s1508_s22, 9  ;;  %s1515_s27 = scalar_lea.hbm %s2808_s0, %s1095_s23 }
  0x11   : > { %s147_s28 = scalar_lea.vmem [#allocation3], %s1036_s24  ;;  %p1519_p9 = pnand %p1110_p8, %p1492_p3 }
  0x12   : > { %s157_s29 = sshll.u32 %s147_s28, 4  ;;  %s144_s3 = scalar_lea.sflag [#allocation4], %s1508_s22  ;;  %s1523_s29 = int_to_ptr.vmem [resolvable:$true] %s157_s29 }
  0x13   : > { %s1321_s4 = scalar_lea.hbm %s1515_s27, 8192  ;;  %p1323_p11 = pneg %p1519_p9 }
  0x14   : > { %p1322_p10 = scmp.ne.s32.totalorder %s1515_s27, %s1321_s4  ;;  %s1326_s7 = scalar_lea.hbm %s2808_s0, 16384 }
  0x15   : > { %p1327_p0 = scmp.lt.u32.totalorder %s1515_s27, %s2808_s0  ;;  %p1328_p1 = scmp.lt.u32.totalorder %s1326_s7, %s1321_s4 }
  0x16   : > { %p1324_p12 = pnand %p1323_p11, %p1322_p10  ;;  %p1330_p3 = scmp.lt.u32.totalorder %s1321_s4, %s1515_s27 }
  0x17   : > { %p1329_p2 = por %p1328_p1, %p1327_p0 }
  0x18   : > { %p1325_p13 = pneg %p1324_p12 }
  0x19   : > { %p1331_p4 = por %p1330_p3, %p1329_p2 }
  0x1b   : > { %p1332_p5 = pnand %p1331_p4, %p1325_p13 }
  0x1d   : > { %1335 = shalt.err (!%p1332_p5)
}
  0x1e   : > { %s1336_s15 = scalar_lea.vmem %s1523_s29, 8192  ;;  %s1437_s17 = smov [#allocation3]  }
  0x1f   : > { %p1337_p6 = scmp.ne.s32.totalorder %s1523_s29, %s1336_s15  ;;  %s1341_s18 = sshll.u32 %s1437_s17, 4  ;;  %s1342_s18 = int_to_ptr.vmem [resolvable:$false] %s1341_s18 }
  0x20   : > { %s1343_s19 = scalar_lea.vmem %s1342_s18, 16384  ;;  %p1344_p12 = scmp.lt.s32.totalorder %s1523_s29, %s1342_s18 }
  0x21   : > { %p1339_p8 = pnand %p1337_p6, %p1323_p11  ;;  %p1345_p0 = scmp.lt.s32.totalorder %s1343_s19, %s1336_s15 }
  0x23   : > { %p1340_p10 = pneg %p1339_p8  ;;  %p1346_p1 = por %p1345_p0, %p1344_p12 }
  0x25   : > { %p1347_p2 = pnand %p1346_p1, %p1340_p10 }
  0x27   : > { %1350 = shalt.err (!%p1347_p2)
}
  0x28   : > { %s1438_s23 = smov 128   ;;  %s1439_s24 = smov 8  }
  0x29   : > { %1106 = dma.hbm_to_vmem [thread:$0]  (!%p1519_p9), %s1515_s27, 8192, %s1523_s29, %s144_s3, %s1438_s23, %s1438_s23, %s1439_s24  }
  0x2a   : > { %p1042_p13 = scmp.ge.s32.totalorder %s1435_s14, 1  ;;  %p189_p3 = scmp.lt.s32.totalorder %s1435_s14, 3 }
  0x2b   : > { %s1039_s25 = sshll.u32 %s1508_s22, 5  ;;  %s1096_s28 = sshll.u32 %s1431_s13, 9 }
  0x2c   : > { %p1559_p4 = pnand %p1042_p13, %p189_p3  ;;  %s171_s4 = scalar_lea.vmem [#allocation5], %s1039_s25 }
  0x2d   : > { %s181_s5 = sshll.u32 %s171_s4, 4  ;;  %s1567_s8 = scalar_lea.hbm %s2809_s1, %s1096_s28  ;;  %s1569_s5 = int_to_ptr.vmem [resolvable:$true] %s181_s5 }
  0x2e   : > { %s168_s27 = scalar_lea.sflag [#allocation6], %s1508_s22  ;;  %s1351_s29 = scalar_lea.hbm %s1567_s8, 512 }
  0x2f   : > { %p1352_p5 = scmp.ne.s32.totalorder %s1567_s8, %s1351_s29  ;;  %s1356_s15 = scalar_lea.hbm %s2809_s1, 1024 }
  0x30   : > { %p1357_p10 = scmp.lt.u32.totalorder %s1567_s8, %s2809_s1  ;;  %p1358_p12 = scmp.lt.u32.totalorder %s1356_s15, %s1351_s29 }
  0x31   : > { %p1354_p6 = pnand %p1352_p5, %p1323_p11  ;;  %p1360_p1 = scmp.lt.u32.totalorder %s1351_s29, %s1567_s8 }
  0x32   : > { %p1359_p0 = por %p1358_p12, %p1357_p10 }
  0x33   : > { %p1355_p8 = pneg %p1354_p6 }
  0x34   : > { %p1361_p2 = por %p1360_p1, %p1359_p0 }
  0x36   : > { %p1362_p13 = pnand %p1361_p2, %p1355_p8 }
  0x38   : > { %1365 = shalt.err (!%p1362_p13)
}
  0x39   : > { %s1366_s19 = scalar_lea.vmem %s1569_s5, 512  ;;  %s1440_s25 = smov [#allocation5]  }
  0x3a   : > { %p1367_p3 = scmp.ne.s32.totalorder %s1569_s5, %s1366_s19  ;;  %s1371_s28 = sshll.u32 %s1440_s25, 4  ;;  %s1372_s28 = int_to_ptr.vmem [resolvable:$false] %s1371_s28 }
  0x3b   : > { %s1373_s4 = scalar_lea.vmem %s1372_s28, 1024  ;;  %p1374_p7 = scmp.lt.s32.totalorder %s1569_s5, %s1372_s28 }
  0x3c   : > { %p1369_p5 = pnand %p1367_p3, %p1323_p11  ;;  %p1375_p10 = scmp.lt.s32.totalorder %s1373_s4, %s1366_s19 }
  0x3e   : > { %p1370_p6 = pneg %p1369_p5  ;;  %p1376_p12 = por %p1375_p10, %p1374_p7 }
  0x40   : > { %p1377_p0 = pnand %p1376_p12, %p1370_p6 }
  0x42   : > { %1380 = shalt.err (!%p1377_p0)
}
  0x43   : > { %1109 = dma.hbm_to_vmem [thread:$0]  (!%p1519_p9), %s1567_s8, 512, %s1569_s5, %s168_s27, %s1438_s23, %s1438_s23, %s1439_s24  }
  0x44   : > { %193 = sbr.rel (%p1559_p4) target bundleno = 447 (0x1bf), region = 28 }
  0x4b   : > { %s195_s6 = sand.u32 1, %s1419_s10   ;;  %p2920_p7 = scmp.ne.s32.totalorder %s2917_s20, 0 }
  0x4c   : > { %s1043_s7 = sshll.u32 %s195_s6, 9  ;;  %s196_s29 = scalar_lea.sflag [#allocation4], %s195_s6 }
  0x4d   : > { %s1603_s3 = scalar_lea.vmem [#allocation3], %s1043_s7 }
  0x4e   : > { %1406 = dma.done.wait (%p2920_p7), %s196_s29, 8192  }
  0x4f   : > { %1408 = vsyncadd (%p2920_p7), %s196_s29, 4294959104  ;;  %s1044_s22 = sshll.u32 %s195_s6, 5  ;;  %s205_s30 = scalar_lea.sflag [#allocation6], %s195_s6 }
  0x50   : > { %s208_s9 = scalar_lea.vmem [#allocation5], %s1044_s22 }
  0x51   : > { %1410 = dma.done.wait (%p2920_p7), %s205_s30, 512  }
  0x52   : > { %1412 = vsyncadd (%p2920_p7), %s205_s30, 4294966784  ;;  %v247_v0 = vld [vmem:[%s208_s9] sm:$0xff]  ;;  %v248_v1 = vld [vmem:[%s208_s9 + $0x8] sm:$0xff]  ;;  %p238_p9 = scmp.lt.s32.totalorder %s1427_s12, 1 }
  0x53   : > { %v1613_v2 = vld [vmem:[%s208_s9 + $0x10] sm:$0xff]  ;;  %v1615_v3 = vld [vmem:[%s208_s9 + $0x18] sm:$0xff]  ;;  %v251_v4 = vunpack.c.0.s8 %v247_v0  ;;  %v252_v5 = vunpack.c.1.s8 %v247_v0  ;;  %v253_v6 = vunpack.c.2.s8 %v247_v0  ;;  %v254_v7 = vunpack.c.3.s8 %v247_v0  ;;  %v1618_v8 = vld [vmem:[%s1603_s3] sm:$0xff] }
  0x54   : > { %v1621_v9 = vld [vmem:[%s1603_s3 + $0x80] sm:$0xff]  ;;  %v255_v10 = vunpack.c.0.s8 %v248_v1  ;;  %v256_v11 = vunpack.c.1.s8 %v248_v1  ;;  %v257_v12 = vunpack.c.2.s8 %v248_v1  ;;  %v258_v13 = vunpack.c.3.s8 %v248_v1  ;;  %v1624_v14 = vld [vmem:[%s1603_s3 + $0x8] sm:$0xff]  ;;  %v1634_v20 = vld [vmem:[%s1603_s3 + $0x10] sm:$0xff]  ;;  %s3186_s12 = smov (!%p238_p9, %s1427_s12), 1 }
  0x55   : > { %v1627_v15 = vld [vmem:[%s1603_s3 + $0x88] sm:$0xff]  ;;  %v259_v16 = vunpack.c.0.s8 %v1613_v2  ;;  %v260_v17 = vunpack.c.1.s8 %v1613_v2  ;;  %v261_v18 = vunpack.c.2.s8 %v1613_v2  ;;  %v262_v19 = vunpack.c.3.s8 %v1613_v2  ;;  %v1637_v21 = vld [vmem:[%s1603_s3 + $0x18] sm:$0xff]  ;;  %v1640_v22 = vld [vmem:[%s1603_s3 + $0x90] sm:$0xff]  ;;  %s240_s24 = scalar_lea.vmem %s2810_s2, %s3186_s12 }
  0x56   : > { %2921 = vst [vmem:[#allocation9_spill] sm:$0xff] %v1627_v15  ;;  %2922 = vst [vmem:[#allocation10_spill] sm:$0xff] %v1640_v22  ;;  %v263_v23 = vunpack.c.0.s8 %v1615_v3  ;;  %v264_v24 = vunpack.c.1.s8 %v1615_v3  ;;  %v265_v25 = vunpack.c.2.s8 %v1615_v3  ;;  %v1646_v26 = vld [vmem:[%s1603_s3 + $0x20] sm:$0xff]  ;;  %v1649_v27 = vld [vmem:[%s1603_s3 + $0x28] sm:$0xff]  ;;  %v316_v29 = vmax.f32 %v1618_v8, %v1621_v9 }
  0x57   : > { %v1652_v28 = vld [vmem:[%s1603_s3 + $0x98] sm:$0xff]  ;;  %v266_v30 = vunpack.c.3.s8 %v1615_v3  ;;  %v1657_v31 = vand.u32 255, %v251_v4  ;;  %v1659_v32 = vand.u32 255, %v252_v5  ;;  %v1662_v33 = vld [vmem:[%s1603_s3 + $0x30] sm:$0xff]  ;;  %v1665_v34 = vld [vmem:[%s1603_s3 + $0xa0] sm:$0xff]  ;;  %v317_v36 = vmax.f32 %v1624_v14, %v1627_v15 }
  0x58   : > { %2923 = vst [vmem:[#allocation11_spill] sm:$0xff] %v1652_v28  ;;  %2925 = vst [vmem:[#allocation13_spill] sm:$0xff] %v1665_v34  ;;  %v1668_v35 = vld [vmem:[%s1603_s3 + $0xa8] sm:$0xff]  ;;  %v1673_v37 = vld [vmem:[%s1603_s3 + $0x100] sm:$0xff]  ;;  %v1675_v38 = vand.u32 255, %v253_v6  ;;  %v1677_v39 = vand.u32 255, %v254_v7  ;;  %v318_v44 = vmax.f32 %v1634_v20, %v1640_v22  ;;  %v319_v53 = vmax.f32 %v1637_v21, %v1652_v28 }
  0x59   : > { %2924 = vst [vmem:[#allocation12_spill] sm:$0xff] %v1657_v31  ;;  %2926 = vst [vmem:[#allocation14_spill] sm:$0xff] %v1668_v35  ;;  %v1679_v40 = vand.u32 255, %v255_v10  ;;  %v1682_v41 = vld [vmem:[%s1603_s3 + $0x38] sm:$0xff]  ;;  %v1685_v42 = vld [vmem:[%s1603_s3 + $0xb0] sm:$0xff]  ;;  %v1695_v46 = vand.u32 255, %v256_v11  ;;  %v320_v61 = vmax.f32 %v1646_v26, %v1665_v34  ;;  %v349_v63 = vmax.f32 %v316_v29, %v1673_v37 }
  0x5a   : > { %2927 = vst [vmem:[#allocation15_spill] sm:$0xff] %v1673_v37  ;;  %2929 = vst [vmem:[#allocation17_spill] sm:$0xff] %v1685_v42  ;;  %v1688_v43 = vld [vmem:[%s1603_s3 + $0xb8] sm:$0xff]  ;;  %v1693_v45 = vld [vmem:[%s1603_s3 + $0x108] sm:$0xff]  ;;  %v1697_v47 = vand.u32 255, %v257_v12  ;;  %v1699_v48 = vand.u32 255, %v258_v13  ;;  %v321_v5 = vmax.f32 %v1649_v27, %v1668_v35 }
  0x5b   : > { %2928 = vst [vmem:[#allocation16_spill] sm:$0xff] %v1679_v40  ;;  %2930 = vst [vmem:[#allocation18_spill] sm:$0xff] %v1688_v43  ;;  %v1702_v49 = vld [vmem:[%s1603_s3 + $0x40] sm:$0xff]  ;;  %v1705_v50 = vld [vmem:[%s1603_s3 + $0x48] sm:$0xff]  ;;  %v1718_v55 = vand.u32 255, %v259_v16  ;;  %v1720_v56 = vand.u32 255, %v260_v17  ;;  %v350_v7 = vmax.f32 %v317_v36, %v1693_v45  ;;  %v323_v37 = vmax.f32 %v1682_v41, %v1688_v43 }
  0x5c   : > { %2931 = vst [vmem:[#allocation19_spill] sm:$0xff] %v1693_v45  ;;  %v1708_v51 = vld [vmem:[%s1603_s3 + $0xc0] sm:$0xff]  ;;  %v1711_v52 = vld [vmem:[%s1603_s3 + $0xc8] sm:$0xff]  ;;  %v1716_v54 = vld [vmem:[%s1603_s3 + $0x110] sm:$0xff]  ;;  %v1740_v0 = vand.u32 255, %v261_v18  ;;  %v1742_v1 = vand.u32 255, %v262_v19  ;;  %v322_v18 = vmax.f32 %v1662_v33, %v1685_v42 }
  0x5d   : > { %2932 = vst [vmem:[#allocation20_spill] sm:$0xff] %v1708_v51  ;;  %2933 = vst [vmem:[#allocation21_spill] sm:$0xff] %v1711_v52  ;;  %v1723_v57 = vld [vmem:[%s1603_s3 + $0x50] sm:$0xff]  ;;  %v1726_v58 = vld [vmem:[%s1603_s3 + $0x58] sm:$0xff]  ;;  %v1762_v11 = vand.u32 255, %v263_v23  ;;  %v1764_v12 = vand.u32 255, %v264_v24  ;;  %v351_v29 = vmax.f32 %v318_v44, %v1716_v54 }
  0x5e   : > { %2934 = vst [vmem:[#allocation22_spill] sm:$0xff] %v1716_v54  ;;  %v1729_v59 = vld [vmem:[%s1603_s3 + $0xd0] sm:$0xff]  ;;  %v1732_v60 = vld [vmem:[%s1603_s3 + $0xd8] sm:$0xff]  ;;  %v1745_v2 = vld [vmem:[%s1603_s3 + $0x60] sm:$0xff]  ;;  %v1784_v36 = vand.u32 255, %v265_v25  ;;  %v1786_v24 = vand.u32 255, %v266_v30  ;;  %v324_v25 = vmax.f32 %v1702_v49, %v1708_v51  ;;  %v325_v30 = vmax.f32 %v1705_v50, %v1711_v52 }
  0x5f   : > { %2935 = vst [vmem:[#allocation23_spill] sm:$0xff] %v1729_v59  ;;  %2936 = vst [vmem:[#allocation24_spill] sm:$0xff] %v1732_v60  ;;  %v1737_v62 = vld [vmem:[%s1603_s3 + $0x118] sm:$0xff]  ;;  %v1748_v3 = vld [vmem:[%s1603_s3 + $0x68] sm:$0xff]  ;;  %v327_v51 = vmax.f32 %v1726_v58, %v1732_v60  ;;  %vm462_vm0 = vcmp.eq.s32.totalorder %v1657_v31, 0  ;;  %vm463_vm1 = vcmp.eq.s32.totalorder %v1659_v32, 0 }
  0x60   : > { %2937 = vst [vmem:[#allocation25_spill] sm:$0xff] %v1737_v62  ;;  %v1751_v4 = vld [vmem:[%s1603_s3 + $0xe0] sm:$0xff]  ;;  %2941 = vst [vmem:[#allocation29_spill] sm:$0xff] %v1762_v11  ;;  %v1767_v13 = vld [vmem:[%s1603_s3 + $0x70] sm:$0xff]  ;;  %v352_v35 = vmax.f32 %v319_v53, %v1737_v62  ;;  %v326_v62 = vmax.f32 %v1723_v57, %v1729_v59  ;;  %vm464_vm2 = vcmp.eq.s32.totalorder %v1675_v38, 0  ;;  %vm465_vm3 = vcmp.eq.s32.totalorder %v1677_v39, 0 }
  0x61   : > { %2938 = vst [vmem:[#allocation26_spill] sm:$0xff] %v1751_v4  ;;  %v1756_v6 = vld [vmem:[%s1603_s3 + $0x120] sm:$0xff]  ;;  %2942 = vst [vmem:[#allocation30_spill] sm:$0xff] %v1764_v12  ;;  %v1770_v16 = vld [vmem:[%s1603_s3 + $0x78] sm:$0xff]  ;;  %vm466_vm4 = vcmp.eq.s32.totalorder %v1679_v40, 0  ;;  %vm467_vm5 = vcmp.eq.s32.totalorder %v1695_v46, 0 }
  0x62   : > { %2939 = vst [vmem:[#allocation27_spill] sm:$0xff] %v1756_v6  ;;  %v1760_v10 = vld [vmem:[%s1603_s3 + $0x180] sm:$0xff]  ;;  %v1773_v17 = vld [vmem:[%s1603_s3 + $0xe8] sm:$0xff]  ;;  %2946 = vst [vmem:[#allocation34_spill] sm:$0xff] %v1784_v36  ;;  %v353_v43 = vmax.f32 %v320_v61, %v1756_v6  ;;  %vm468_vm6 = vcmp.eq.s32.totalorder %v1697_v47, 0  ;;  %vm469_vm7 = vcmp.eq.s32.totalorder %v1699_v48, 0 }
  0x63   : > { %2940 = vst [vmem:[#allocation28_spill] sm:$0xff] %v1760_v10  ;;  %2943 = vst [vmem:[#allocation31_spill] sm:$0xff] %v1773_v17  ;;  %v1778_v19 = vld [vmem:[%s1603_s3 + $0x128] sm:$0xff]  ;;  %v1789_v45 = vld [vmem:[%s1603_s3 + $0xf0] sm:$0xff]  ;;  %v1815_v53 = vmax.f32 %v349_v63, %v1760_v10  ;;  %v328_v10 = vmax.f32 %v1745_v2, %v1751_v4  ;;  %v329_v60 = vmax.f32 %v1748_v3, %v1773_v17  ;;  %vm470_vm8 = vcmp.eq.s32.totalorder %v1718_v55, 0 }
  0x64   : > { %2944 = vst [vmem:[#allocation32_spill] sm:$0xff] %v1778_v19  ;;  %v1782_v23 = vld [vmem:[%s1603_s3 + $0x188] sm:$0xff]  ;;  %2947 = vst [vmem:[#allocation35_spill] sm:$0xff] %v1786_v24  ;;  %v1794_v42 = vld [vmem:[%s1603_s3 + $0x130] sm:$0xff]  ;;  %v354_v61 = vmax.f32 %v321_v5, %v1778_v19  ;;  %vm471_vm9 = vcmp.eq.s32.totalorder %v1720_v56, 0  ;;  %vm472_vm10 = vcmp.eq.s32.totalorder %v1740_v0, 0 }
  0x65   : > { %2945 = vst [vmem:[#allocation33_spill] sm:$0xff] %v1782_v23  ;;  %2948 = vst [vmem:[#allocation36_spill] sm:$0xff] %v1789_v45  ;;  %v1798_v34 = vld [vmem:[%s1603_s3 + $0x190] sm:$0xff]  ;;  %v1801_v44 = vld [vmem:[%s1603_s3 + $0xf8] sm:$0xff]  ;;  %v1832_v63 = vmax.f32 %v350_v7, %v1782_v23  ;;  %v355_v5 = vmax.f32 %v322_v18, %v1794_v42  ;;  %v330_v7 = vmax.f32 %v1767_v13, %v1789_v45  ;;  %vm473_vm11 = vcmp.eq.s32.totalorder %v1742_v1, 0 }
  0x66   : > { %2949 = vst [vmem:[#allocation37_spill] sm:$0xff] %v1794_v42  ;;  %2950 = vst [vmem:[#allocation38_spill] sm:$0xff] %v1798_v34  ;;  %v1808_v54 = vld [vmem:[%s1603_s3 + $0x138] sm:$0xff]  ;;  %v1822_v22 = vld [vmem:[%s1603_s3 + $0x140] sm:$0xff]  ;;  %v1849_v36 = vmax.f32 %v351_v29, %v1798_v34  ;;  %v331_v23 = vmax.f32 %v1770_v16, %v1801_v44 }
  0x67   : > { %2951 = vst [vmem:[#allocation39_spill] sm:$0xff] %v1801_v44  ;;  %2952 = vst [vmem:[#allocation40_spill] sm:$0xff] %v1808_v54  ;;  %v1812_v28 = vld [vmem:[%s1603_s3 + $0x198] sm:$0xff]  ;;  %v1825_v52 = vld [vmem:[%s1603_s3 + $0x148] sm:$0xff]  ;;  %v356_v12 = vmax.f32 %v323_v37, %v1808_v54  ;;  %v357_v44 = vmax.f32 %v324_v25, %v1822_v22 }
  0x68   : > { %2953 = vst [vmem:[#allocation41_spill] sm:$0xff] %v1812_v28  ;;  %2954 = vst [vmem:[#allocation42_spill] sm:$0xff] %v1822_v22  ;;  %v1829_v6 = vld [vmem:[%s1603_s3 + $0x1a0] sm:$0xff]  ;;  %v1839_v59 = vld [vmem:[%s1603_s3 + $0x150] sm:$0xff]  ;;  %v1866_v42 = vmax.f32 %v352_v35, %v1812_v28  ;;  %v358_v45 = vmax.f32 %v325_v30, %v1825_v52  ;;  %v1884_v35 = vsub.f32 %v1618_v8, %v1815_v53 }
  0x69   : > { %2955 = vst [vmem:[#allocation43_spill] sm:$0xff] %v1825_v52  ;;  %2956 = vst [vmem:[#allocation44_spill] sm:$0xff] %v1829_v6  ;;  %v1842_v24 = vld [vmem:[%s1603_s3 + $0x158] sm:$0xff]  ;;  %v1846_v19 = vld [vmem:[%s1603_s3 + $0x1a8] sm:$0xff]  ;;  %v1880_v15 = vmax.f32 %v353_v43, %v1829_v6  ;;  %v359_v37 = vmax.f32 %v326_v62, %v1839_v59  ;;  %v1899_v43 = vsub.f32 %v1624_v14, %v1832_v63 }
  0x6a   : > { %2957 = vst [vmem:[#allocation45_spill] sm:$0xff] %v1832_v63  ;;  %2958 = vst [vmem:[#allocation46_spill] sm:$0xff] %v1839_v59  ;;  %v1856_v17 = vld [vmem:[%s1603_s3 + $0x160] sm:$0xff]  ;;  %v1859_v4 = vld [vmem:[%s1603_s3 + $0x168] sm:$0xff]  ;;  %v360_v28 = vmax.f32 %v327_v51, %v1842_v24  ;;  %v1895_v30 = vmax.f32 %v354_v61, %v1846_v19  ;;  %v1914_v59 = vsub.f32 %v1634_v20, %v1849_v36 }
  0x6b   : > { %2959 = vst [vmem:[#allocation47_spill] sm:$0xff] %v1842_v24  ;;  %2960 = vst [vmem:[#allocation48_spill] sm:$0xff] %v1846_v19  ;;  %v1863_v18 = vld [vmem:[%s1603_s3 + $0x1b0] sm:$0xff]  ;;  %v1872_v34 = vld [vmem:[%s1603_s3 + $0x178] sm:$0xff]  ;;  %v361_v8 = vmax.f32 %v328_v10, %v1856_v17  ;;  %v362_v6 = vmax.f32 %v329_v60, %v1859_v4 }
  0x6c   : > { %2961 = vst [vmem:[#allocation49_spill] sm:$0xff] %v1849_v36  ;;  %2962 = vst [vmem:[#allocation50_spill] sm:$0xff] %v1856_v17  ;;  %v1869_v29 = vld [vmem:[%s1603_s3 + $0x170] sm:$0xff]  ;;  %v1877_v11 = vld [vmem:[%s1603_s3 + $0x1b8] sm:$0xff]  ;;  %v1910_v24 = vmax.f32 %v355_v5, %v1863_v18  ;;  %v364_v14 = vmax.f32 %v331_v23, %v1872_v34 }
  0x6d   : > { %2963 = vst [vmem:[#allocation51_spill] sm:$0xff] %v1859_v4  ;;  %2964 = vst [vmem:[#allocation52_spill] sm:$0xff] %v1863_v18  ;;  %v1889_v54 = vld [vmem:[%s1603_s3 + $0x1c0] sm:$0xff]  ;;  %v1892_v25 = vld [vmem:[%s1603_s3 + $0x1c8] sm:$0xff]  ;;  %v363_v61 = vmax.f32 %v330_v7, %v1869_v29  ;;  %v1925_v60 = vmax.f32 %v356_v12, %v1877_v11  ;;  %v1929_v4 = vsub.f32 %v1637_v21, %v1866_v42  ;;  %v414_v12 = vmul.f32 1.442695, %v1884_v35 }
  0x6e   : > { %2965 = vst [vmem:[#allocation53_spill] sm:$0xff] %v1866_v42  ;;  %2966 = vst [vmem:[#allocation54_spill] sm:$0xff] %v1869_v29  ;;  %v1904_v62 = vld [vmem:[%s1603_s3 + $0x1d0] sm:$0xff]  ;;  %v1907_v51 = vld [vmem:[%s1603_s3 + $0x1d8] sm:$0xff]  ;;  %v1938_v20 = vmax.f32 %v357_v44, %v1889_v54  ;;  %v1941_v23 = vmax.f32 %v358_v45, %v1892_v25  ;;  %v1945_v7 = vsub.f32 %v1646_v26, %v1880_v15  ;;  %v416_v44 = vmul.f32 1.442695, %v1899_v43 }
  0x6f   : > { %2967 = vst [vmem:[#allocation55_spill] sm:$0xff] %v1872_v34  ;;  %2968 = vst [vmem:[#allocation56_spill] sm:$0xff] %v1877_v11  ;;  %v1919_v19 = vld [vmem:[%s1603_s3 + $0x1e0] sm:$0xff]  ;;  %v1922_v10 = vld [vmem:[%s1603_s3 + $0x1e8] sm:$0xff]  ;;  %v1949_v11 = vmax.f32 %v359_v37, %v1904_v62  ;;  %v1952_v21 = vmax.f32 %v360_v28, %v1907_v51  ;;  %v1956_v34 = vsub.f32 %v1649_v27, %v1895_v30  ;;  %v418_v27 = vmul.f32 1.442695, %v1914_v59 }
  0x70   : > { %2969 = vst [vmem:[#allocation57_spill] sm:$0xff] %v1880_v15  ;;  %2970 = vst [vmem:[#allocation58_spill] sm:$0xff] %v1889_v54  ;;  %v1932_v5 = vld [vmem:[%s1603_s3 + $0x1f0] sm:$0xff]  ;;  %v1935_v18 = vld [vmem:[%s1603_s3 + $0x1f8] sm:$0xff]  ;;  %v1963_v26 = vmax.f32 %v361_v8, %v1919_v19  ;;  %v1966_v45 = vmax.f32 %v362_v6, %v1922_v10  ;;  %v404_v28 = vsub.f32 %v1662_v33, %v1910_v24  ;;  %1161 = vpow2.f32 %v414_v12 }
  0x71   : > { %2971 = vst [vmem:[#allocation59_spill] sm:$0xff] %v1892_v25  ;;  %2972 = vst [vmem:[#allocation60_spill] sm:$0xff] %v1895_v30  ;;  %v1975_v37 = vmax.f32 %v363_v61, %v1932_v5  ;;  %v1978_v8 = vmax.f32 %v364_v14, %v1935_v18  ;;  %v405_v6 = vsub.f32 %v1682_v41, %v1925_v60  ;;  %v422_v61 = vmul.f32 1.442695, %v1945_v7  ;;  %v2990_v54 = vld [vmem:[#allocation29_spill] sm:$0xff]  ;;  %v2996_v17 = vld [vmem:[#allocation10_spill] sm:$0xff] }
  0x72   : > { %2973 = vst [vmem:[#allocation61_spill] sm:$0xff] %v1904_v62  ;;  %2974 = vst [vmem:[#allocation62_spill] sm:$0xff] %v1907_v51  ;;  %v406_v33 = vsub.f32 %v1702_v49, %v1938_v20  ;;  %v408_v41 = vsub.f32 %v1723_v57, %v1949_v11  ;;  %v409_v14 = vsub.f32 %v1726_v58, %v1952_v21  ;;  %1163 = vpow2.f32 %v416_v44 }
  0x73   : > { %2975 = vst [vmem:[#allocation63_spill] sm:$0xff] %v1910_v24  ;;  %2976 = vst [vmem:[#allocation64_spill] sm:$0xff] %v1919_v19  ;;  %v407_v19 = vsub.f32 %v1705_v50, %v1941_v23  ;;  %v410_v49 = vsub.f32 %v1745_v2, %v1963_v26  ;;  %v2002_v50 = vsub.f32 %v1748_v3, %v1966_v45  ;;  %1165 = vpow2.f32 %v418_v27 }
  0x74   : > { %2977 = vst [vmem:[#allocation65_spill] sm:$0xff] %v1922_v10  ;;  %2978 = vst [vmem:[#allocation66_spill] sm:$0xff] %v1925_v60  ;;  %v420_v10 = vmul.f32 1.442695, %v1929_v4  ;;  %v426_v12 = vmul.f32 1.442695, %v404_v28  ;;  %v2006_v57 = vsub.f32 %v1767_v13, %v1975_v37  ;;  %v2010_v58 = vsub.f32 %v1770_v16, %v1978_v8 }
  0x75   : > { %2979 = vst [vmem:[#allocation67_spill] sm:$0xff] %v1932_v5  ;;  %2980 = vst [vmem:[#allocation68_spill] sm:$0xff] %v1935_v18  ;;  %v424_v18 = vmul.f32 1.442695, %v1956_v34  ;;  %v428_v44 = vmul.f32 1.442695, %v405_v6  ;;  %v2015_v2 = vsub.f32 %v1621_v9, %v1815_v53 }
  0x76   : > { %2981 = vst [vmem:[#allocation69_spill] sm:$0xff] %v1938_v20  ;;  %2982 = vst [vmem:[#allocation70_spill] sm:$0xff] %v1941_v23  ;;  %1167 = vpow2.f32 %v420_v10  ;;  %v430_v5 = vmul.f32 1.442695, %v406_v33  ;;  %v432_v3 = vmul.f32 1.442695, %v407_v19 }
  0x77   : > { %2983 = vst [vmem:[#allocation71_spill] sm:$0xff] %v1949_v11  ;;  %2984 = vst [vmem:[#allocation72_spill] sm:$0xff] %v1952_v21  ;;  %1169 = vpow2.f32 %v422_v61  ;;  %v434_v27 = vmul.f32 1.442695, %v408_v41  ;;  %v2989_v13 = vld [vmem:[#allocation9_spill] sm:$0xff]  ;;  %vm474_vm12 = vcmp.eq.s32.totalorder %v2990_v54, 0 }
  0x78   : > { %2985 = vst [vmem:[#allocation73_spill] sm:$0xff] %v1963_v26  ;;  %2986 = vst [vmem:[#allocation74_spill] sm:$0xff] %v1966_v45  ;;  %1171 = vpow2.f32 %v424_v18  ;;  %v2019_v51 = vsub.f32 %v2989_v13, %v1832_v63  ;;  %v436_v16 = vmul.f32 1.442695, %v409_v14  ;;  %v438_v62 = vmul.f32 1.442695, %v410_v49 }
  0x79   : > { %2987 = vst [vmem:[#allocation75_spill] sm:$0xff] %v1975_v37  ;;  %2988 = vst [vmem:[#allocation76_spill] sm:$0xff] %v1978_v8  ;;  %1173 = vpow2.f32 %v426_v12  ;;  %v440_v10 = vmul.f32 1.442695, %v2002_v50  ;;  %v442_v61 = vmul.f32 1.442695, %v2006_v57 }
  0x7a   : > { %1175 = vpow2.f32 %v428_v44  ;;  %v444_v25 = vmul.f32 1.442695, %v2010_v58  ;;  %v2991_v9 = vld [vmem:[#allocation30_spill] sm:$0xff]  ;;  %v2029_v18 = vsel %vm462_vm0, %v1884_v35, 0.0  ;;  %v2034_v12 = vsel %vm463_vm1, %v1899_v43, 0.0 }
  0x7b   : > { %1177 = vpow2.f32 %v430_v5  ;;  %vm475_vm13 = vcmp.eq.s32.totalorder %v2991_v9, 0  ;;  %v2039_v44 = vsel %vm464_vm2, %v1914_v59, 0.0  ;;  %v2992_v13 = vld [vmem:[#allocation34_spill] sm:$0xff]  ;;  %v2993_v5 = vld [vmem:[#allocation35_spill] sm:$0xff]  ;;  %v2046_v35 = vsel %vm465_vm3, %v1929_v4, 0.0 }
  0x7c   : > { %1179 = vpow2.f32 %v432_v3  ;;  %vm476_vm14 = vcmp.eq.s32.totalorder %v2992_v13, 0  ;;  %vm477_vm15 = vcmp.eq.s32.totalorder %v2993_v5, 0  ;;  %v2051_v43 = vsel %vm466_vm4, %v1945_v7, 0.0  ;;  %v2058_v3 = vpop.eup %1161 }
  0x7d   : > { %v2056_v59 = vsel %vm467_vm5, %v1956_v34, 0.0  ;;  %1181 = vpow2.f32 %v434_v27  ;;  %v2062_v29 = vsel %vm468_vm6, %v404_v28, 0.0  ;;  %v2066_v4 = vsel %vm469_vm7, %v405_v6, 0.0  ;;  %v2072_v52 = vpop.eup %1163  ;;  %v2999_v28 = vld [vmem:[#allocation11_spill] sm:$0xff] }
  0x7e   : > { %2994 = vst [vmem:[#allocation9_spill] sm:$0xff] %v2062_v29  ;;  %2995 = vst [vmem:[#allocation29_spill] sm:$0xff] %v2066_v4  ;;  %v2070_v7 = vsub.f32 %v2996_v17, %v1849_v36  ;;  %1183 = vpow2.f32 %v436_v16  ;;  %v2076_v34 = vsel %vm470_vm8, %v406_v33, 0.0  ;;  %v2080_v27 = vsel %vm471_vm9, %v407_v19, 0.0  ;;  %v2086_v6 = vpop.eup %1165  ;;  %v3001_v16 = vld [vmem:[#allocation13_spill] sm:$0xff] }
  0x7f   : > { %2997 = vst [vmem:[#allocation10_spill] sm:$0xff] %v2076_v34  ;;  %2998 = vst [vmem:[#allocation77_spill] sm:$0xff] %v2080_v27  ;;  %v2084_v22 = vsub.f32 %v2999_v28, %v1866_v42  ;;  %1185 = vpow2.f32 %v438_v62  ;;  %v2090_v17 = vsel %vm472_vm10, %v408_v41, 0.0  ;;  %v2094_v36 = vsub.f32 %v3001_v16, %v1880_v15  ;;  %v3003_v28 = vld [vmem:[#allocation14_spill] sm:$0xff]  ;;  %v3005_v15 = vld [vmem:[#allocation17_spill] sm:$0xff] }
  0x80   : > { %3000 = vst [vmem:[#allocation11_spill] sm:$0xff] %v2090_v17  ;;  %v526_v33 = vmul.f32 1.442695, %v2015_v2  ;;  %v2097_v34 = vpop.eup %1167  ;;  %1187 = vpow2.f32 %v440_v10  ;;  %v2101_v19 = vsel %vm473_vm11, %v409_v14, 0.0  ;;  %v2105_v62 = vsub.f32 %v3003_v28, %v1895_v30  ;;  %v3006_v28 = vld [vmem:[#allocation18_spill] sm:$0xff]  ;;  %v3007_v17 = vld [vmem:[#allocation20_spill] sm:$0xff] }
  0x81   : > { %3002 = vst [vmem:[#allocation13_spill] sm:$0xff] %v2101_v19  ;;  %v528_v41 = vmul.f32 1.442695, %v2019_v51  ;;  %v2108_v42 = vpop.eup %1169  ;;  %1189 = vpow2.f32 %v442_v61  ;;  %v2112_v16 = vsel %vm474_vm12, %v410_v49, 0.0  ;;  %v2116_v10 = vsub.f32 %v3005_v15, %v1910_v24  ;;  %v3008_v15 = vld [vmem:[#allocation21_spill] sm:$0xff]  ;;  %v3009_v27 = vld [vmem:[#allocation23_spill] sm:$0xff] }
  0x82   : > { %3004 = vst [vmem:[#allocation14_spill] sm:$0xff] %v2112_v16  ;;  %v530_v14 = vmul.f32 1.442695, %v2070_v7  ;;  %v2119_v19 = vpop.eup %1171  ;;  %1191 = vpow2.f32 %v444_v25  ;;  %v2123_v30 = vsub.f32 %v3006_v28, %v1925_v60  ;;  %v2127_v61 = vsub.f32 %v3007_v17, %v1938_v20  ;;  %v3010_v17 = vld [vmem:[#allocation24_spill] sm:$0xff]  ;;  %v3011_v60 = vld [vmem:[#allocation26_spill] sm:$0xff] }
  0x83   : > { %v532_v49 = vmul.f32 1.442695, %v2084_v22  ;;  %v2130_v16 = vpop.eup %1173  ;;  %v2134_v24 = vsub.f32 %v3008_v15, %v1941_v23  ;;  %v2138_v63 = vsub.f32 %v3009_v27, %v1949_v11  ;;  %1193 = vpow2.f32 %v526_v33  ;;  %v3012_v27 = vld [vmem:[#allocation31_spill] sm:$0xff]  ;;  %v3013_v11 = vld [vmem:[#allocation36_spill] sm:$0xff] }
  0x84   : > { %v534_v25 = vmul.f32 1.442695, %v2094_v36  ;;  %v2141_v28 = vpop.eup %1175  ;;  %v2145_v20 = vsub.f32 %v3010_v17, %v1952_v21  ;;  %v2149_v4 = vsub.f32 %v3011_v60, %v1963_v26  ;;  %1195 = vpow2.f32 %v528_v41  ;;  %v3014_v41 = vld [vmem:[#allocation39_spill] sm:$0xff] }
  0x85   : > { %v536_v15 = vmul.f32 1.442695, %v2105_v62  ;;  %v2152_v23 = vpop.eup %1177  ;;  %v2156_v33 = vsub.f32 %v3012_v27, %v1966_v45  ;;  %v2160_v29 = vsub.f32 %v3013_v11, %v1975_v37  ;;  %1197 = vpow2.f32 %v530_v14 }
  0x86   : > { %v538_v17 = vmul.f32 1.442695, %v2116_v10  ;;  %v2163_v21 = vpop.eup %1179  ;;  %v2168_v60 = vsel %vm475_vm13, %v2002_v50, 0.0  ;;  %v2172_v26 = vsub.f32 %v3014_v41, %v1978_v8  ;;  %1199 = vpow2.f32 %v532_v49 }
  0x87   : > { %v540_v27 = vmul.f32 1.442695, %v2123_v30  ;;  %v2175_v45 = vpop.eup %1181  ;;  %v2180_v11 = vsel %vm476_vm14, %v2006_v57, 0.0  ;;  %v2185_v14 = vsel %vm477_vm15, %v2010_v58, 0.0  ;;  %1201 = vpow2.f32 %v534_v25 }
  0x88   : > { %3015 = vst [vmem:[#allocation17_spill] sm:$0xff] %v2175_v45  ;;  %3016 = vst [vmem:[#allocation18_spill] sm:$0xff] %v2185_v14  ;;  %v542_v50 = vmul.f32 1.442695, %v2127_v61  ;;  %v2188_v41 = vpop.eup %1183  ;;  %1203 = vpow2.f32 %v536_v15  ;;  %v544_v49 = vmul.f32 1.442695, %v2134_v24 }
  0x89   : > { %3017 = vst [vmem:[#allocation20_spill] sm:$0xff] %v2188_v41  ;;  %v546_v8 = vmul.f32 1.442695, %v2138_v63  ;;  %v548_v37 = vmul.f32 1.442695, %v2145_v20  ;;  %v2193_v45 = vpop.eup %1185  ;;  %1205 = vpow2.f32 %v538_v17  ;;  %vm574_vm0 = vcmp.eq.s32.totalorder %v1657_v31, 1 }
  0x8a   : > { %3018 = vst [vmem:[#allocation21_spill] sm:$0xff] %v2193_v45  ;;  %v550_v57 = vmul.f32 1.442695, %v2149_v4  ;;  %v552_v58 = vmul.f32 1.442695, %v2156_v33  ;;  %v2198_v14 = vpop.eup %1187  ;;  %1207 = vpow2.f32 %v540_v27  ;;  %vm575_vm1 = vcmp.eq.s32.totalorder %v1659_v32, 1 }
  0x8b   : > { %v554_v25 = vmul.f32 1.442695, %v2160_v29  ;;  %3019 = vst [vmem:[#allocation23_spill] sm:$0xff] %v2198_v14  ;;  %v556_v15 = vmul.f32 1.442695, %v2172_v26  ;;  %v2203_v41 = vpop.eup %1189  ;;  %vm576_vm2 = vcmp.eq.s32.totalorder %v1675_v38, 1  ;;  %1209 = vpow2.f32 %v542_v50 }
  0x8c   : > { %3020 = vst [vmem:[#allocation24_spill] sm:$0xff] %v2203_v41  ;;  %vm577_vm3 = vcmp.eq.s32.totalorder %v1677_v39, 1  ;;  %vm578_vm4 = vcmp.eq.s32.totalorder %v1679_v40, 1  ;;  %vm579_vm5 = vcmp.eq.s32.totalorder %v1695_v46, 1  ;;  %v2209_v17 = vpop.eup %1191  ;;  %vm580_vm6 = vcmp.eq.s32.totalorder %v1697_v47, 1 }
  0x8d   : > { %3021 = vst [vmem:[#allocation26_spill] sm:$0xff] %v2209_v17  ;;  %vm581_vm7 = vcmp.eq.s32.totalorder %v1699_v48, 1  ;;  %vm582_vm8 = vcmp.eq.s32.totalorder %v1718_v55, 1  ;;  %v1194_v27 = vpop.eup %1193  ;;  %1211 = vpow2.f32 %v544_v49  ;;  %vm583_vm9 = vcmp.eq.s32.totalorder %v1720_v56, 1 }
  0x8e   : > { %vm584_vm10 = vcmp.eq.s32.totalorder %v1740_v0, 1  ;;  %vm585_vm11 = vcmp.eq.s32.totalorder %v1742_v1, 1  ;;  %v1196_v41 = vpop.eup %1195  ;;  %1213 = vpow2.f32 %v546_v8  ;;  %vm586_vm12 = vcmp.eq.s32.totalorder %v2990_v54, 1 }
  0x8f   : > { %vm587_vm13 = vcmp.eq.s32.totalorder %v2991_v9, 1  ;;  %vm588_vm14 = vcmp.eq.s32.totalorder %v2992_v13, 1  ;;  %v1198_v50 = vpop.eup %1197  ;;  %1215 = vpow2.f32 %v548_v37  ;;  %vm589_vm15 = vcmp.eq.s32.totalorder %v2993_v5, 1  ;;  %v3056_v5 = vld [vmem:[#allocation57_spill] sm:$0xff] }
  0x90   : > { %v590_v49 = vsel %vm574_vm0, %v2015_v2, 0.0  ;;  %v591_v17 = vsel %vm575_vm1, %v2019_v51, 0.0  ;;  %v1200_v14 = vpop.eup %1199  ;;  %1217 = vpow2.f32 %v550_v57  ;;  %v592_v8 = vsel %vm576_vm2, %v2070_v7, 0.0  ;;  %v3068_v13 = vld [vmem:[#allocation37_spill] sm:$0xff] }
  0x91   : > { %v593_v37 = vsel %vm577_vm3, %v2084_v22, 0.0  ;;  %v594_v45 = vsel %vm578_vm4, %v2094_v36, 0.0  ;;  %v1202_v31 = vpop.eup %1201  ;;  %1219 = vpow2.f32 %v552_v58  ;;  %v2237_v2 = vadd.f32 %v1194_v27, %v2058_v3  ;;  %v3035_v27 = vld [vmem:[#allocation29_spill] sm:$0xff] }
  0x92   : > { %v595_v51 = vsel %vm579_vm5, %v2105_v62, 0.0  ;;  %v596_v7 = vsel %vm580_vm6, %v2116_v10, 0.0  ;;  %v1204_v57 = vpop.eup %1203  ;;  %v2246_v22 = vadd.f32 %v1196_v41, %v2072_v52  ;;  %v2249_v40 = vadd.f32 %v1198_v50, %v2086_v6  ;;  %v3037_v50 = vld [vmem:[#allocation45_spill] sm:$0xff] }
  0x93   : > { %v597_v36 = vsel %vm581_vm7, %v2123_v30, 0.0  ;;  %v598_v3 = vsel %vm582_vm8, %v2127_v61, 0.0  ;;  %v1206_v62 = vpop.eup %1205  ;;  %1221 = vpow2.f32 %v554_v25  ;;  %v2258_v58 = vadd.f32 %v1200_v14, %v2097_v34 }
  0x94   : > { %v599_v52 = vsel %vm583_vm9, %v2134_v24, 0.0  ;;  %v600_v6 = vsel %vm584_vm10, %v2138_v63, 0.0  ;;  %v1208_v10 = vpop.eup %1207  ;;  %1223 = vpow2.f32 %v556_v15  ;;  %v2267_v30 = vadd.f32 %v1202_v31, %v2108_v42 }
  0x95   : > { %v601_v61 = vsel %vm585_vm11, %v2145_v20, 0.0  ;;  %v602_v34 = vsel %vm586_vm12, %v2149_v4, 0.0  ;;  %v2276_v14 = vadd.f32 %v1204_v57, %v2119_v19  ;;  %v603_v24 = vsel %vm587_vm13, %v2156_v33, 0.0  ;;  %v1210_v63 = vpop.eup %1209  ;;  %v3042_v57 = vld [vmem:[#allocation77_spill] sm:$0xff] }
  0x96   : > { %3022 = vst [vmem:[#allocation31_spill] sm:$0xff] %v2267_v30  ;;  %v604_v31 = vsel %vm588_vm14, %v2160_v29, 0.0  ;;  %v605_v42 = vsel %vm589_vm15, %v2172_v26, 0.0  ;;  %v2288_v20 = vadd.f32 %v1206_v62, %v2130_v16  ;;  %v2291_v4 = vadd.f32 %v590_v49, %v2029_v18  ;;  %v3031_v16 = vld [vmem:[#allocation15_spill] sm:$0xff] }
  0x97   : > { %3023 = vst [vmem:[#allocation36_spill] sm:$0xff] %v2276_v14  ;;  %v2294_v19 = vadd.f32 %v591_v17, %v2034_v12  ;;  %v2297_v33 = vadd.f32 %v592_v8, %v2039_v44  ;;  %v1212_v41 = vpop.eup %1211  ;;  %v2300_v29 = vadd.f32 %v1208_v10, %v2141_v28  ;;  %v2303_v25 = vadd.f32 %v593_v37, %v2046_v35  ;;  %v3033_v44 = vld [vmem:[#allocation9_spill] sm:$0xff]  ;;  %v3038_v35 = vld [vmem:[#allocation19_spill] sm:$0xff]  ;;  %v3040_v8 = vld [vmem:[#allocation10_spill] sm:$0xff] }
  0x98   : > { %3024 = vst [vmem:[#allocation39_spill] sm:$0xff] %v2288_v20  ;;  %3025 = vst [vmem:[#allocation78_spill] sm:$0xff] %v2291_v4  ;;  %v2306_v26 = vadd.f32 %v594_v45, %v2051_v43  ;;  %v2310_v18 = vsub.f32 %v3031_v16, %v1815_v53  ;;  %v1214_v15 = vpop.eup %1213  ;;  %v2313_v12 = vadd.f32 %v595_v51, %v2056_v59  ;;  %v3044_v51 = vld [vmem:[#allocation49_spill] sm:$0xff]  ;;  %v3047_v16 = vld [vmem:[#allocation11_spill] sm:$0xff]  ;;  %vm687_vm1 = vcmp.eq.s32.totalorder %v1659_v32, 2 }
  0x99   : > { %3026 = vst [vmem:[#allocation79_spill] sm:$0xff] %v2294_v19  ;;  %3027 = vst [vmem:[#allocation80_spill] sm:$0xff] %v2297_v33  ;;  %v2316_v17 = vadd.f32 %v596_v7, %v3033_v44  ;;  %v2319_v28 = vadd.f32 %v597_v36, %v3035_v27  ;;  %v2323_v49 = vsub.f32 %v3038_v35, %v3037_v50  ;;  %v1216_v45 = vpop.eup %1215  ;;  %v3045_v7 = vld [vmem:[#allocation22_spill] sm:$0xff]  ;;  %v3049_v27 = vld [vmem:[#allocation13_spill] sm:$0xff]  ;;  %vm688_vm2 = vcmp.eq.s32.totalorder %v1675_v38, 2 }
  0x9a   : > { %3028 = vst [vmem:[#allocation81_spill] sm:$0xff] %v2300_v29  ;;  %3029 = vst [vmem:[#allocation82_spill] sm:$0xff] %v2303_v25  ;;  %v2326_v43 = vadd.f32 %v1210_v63, %v2152_v23  ;;  %v2329_v37 = vadd.f32 %v598_v3, %v3040_v8  ;;  %v2332_v59 = vadd.f32 %v599_v52, %v3042_v57  ;;  %v1218_v36 = vpop.eup %1217  ;;  %v3051_v63 = vld [vmem:[#allocation53_spill] sm:$0xff]  ;;  %v3053_v8 = vld [vmem:[#allocation14_spill] sm:$0xff]  ;;  %vm689_vm3 = vcmp.eq.s32.totalorder %v1677_v39, 2 }
  0x9b   : > { %3030 = vst [vmem:[#allocation83_spill] sm:$0xff] %v2306_v26  ;;  %3032 = vst [vmem:[#allocation15_spill] sm:$0xff] %v2313_v12  ;;  %v2336_v62 = vsub.f32 %v3045_v7, %v3044_v51  ;;  %v2339_v10 = vadd.f32 %v1212_v41, %v2163_v21  ;;  %v2342_v44 = vadd.f32 %v600_v6, %v3047_v16  ;;  %v3052_v3 = vld [vmem:[#allocation25_spill] sm:$0xff]  ;;  %v1220_v52 = vpop.eup %1219  ;;  %v3057_v21 = vld [vmem:[#allocation27_spill] sm:$0xff]  ;;  %v638_v6 = vmul.f32 1.442695, %v2310_v18 }
  0x9c   : > { %3034 = vst [vmem:[#allocation9_spill] sm:$0xff] %v2316_v17  ;;  %3036 = vst [vmem:[#allocation29_spill] sm:$0xff] %v2319_v28  ;;  %v2345_v23 = vadd.f32 %v601_v61, %v3049_v27  ;;  %v2349_v35 = vsub.f32 %v3052_v3, %v3051_v63  ;;  %v2352_v57 = vadd.f32 %v602_v34, %v3053_v8  ;;  %v3058_v16 = vld [vmem:[#allocation17_spill] sm:$0xff]  ;;  %v3061_v3 = vld [vmem:[#allocation60_spill] sm:$0xff]  ;;  %v640_v34 = vmul.f32 1.442695, %v2323_v49 }
  0x9d   : > { %3039 = vst [vmem:[#allocation45_spill] sm:$0xff] %v2326_v43  ;;  %3041 = vst [vmem:[#allocation19_spill] sm:$0xff] %v2329_v37  ;;  %v2355_v7 = vadd.f32 %v603_v24, %v2168_v60  ;;  %v2359_v41 = vsub.f32 %v3057_v21, %v3056_v5  ;;  %v2363_v61 = vadd.f32 %v1214_v15, %v3058_v16  ;;  %v1222_v60 = vpop.eup %1221  ;;  %v3063_v24 = vld [vmem:[#allocation20_spill] sm:$0xff]  ;;  %v3065_v21 = vld [vmem:[#allocation18_spill] sm:$0xff]  ;;  %1225 = vpow2.f32 %v638_v6 }
  0x9e   : > { %3043 = vst [vmem:[#allocation10_spill] sm:$0xff] %v2332_v59  ;;  %3046 = vst [vmem:[#allocation77_spill] sm:$0xff] %v2339_v10  ;;  %v2366_v27 = vadd.f32 %v604_v31, %v2180_v11  ;;  %v2374_v8 = vadd.f32 %v1216_v45, %v3063_v24  ;;  %v642_v11 = vmul.f32 1.442695, %v2336_v62  ;;  %v1224_v31 = vpop.eup %1223  ;;  %v3069_v16 = vld [vmem:[#allocation21_spill] sm:$0xff]  ;;  %v3073_v10 = vld [vmem:[#allocation66_spill] sm:$0xff]  ;;  %1227 = vpow2.f32 %v640_v34 }
  0x9f   : > { %3048 = vst [vmem:[#allocation49_spill] sm:$0xff] %v2342_v44  ;;  %3050 = vst [vmem:[#allocation22_spill] sm:$0xff] %v2345_v23  ;;  %v3062_v23 = vld [vmem:[#allocation32_spill] sm:$0xff]  ;;  %v3075_v24 = vld [vmem:[#allocation69_spill] sm:$0xff]  ;;  %vm691_vm5 = vcmp.eq.s32.totalorder %v1695_v46, 2  ;;  %vm692_vm6 = vcmp.eq.s32.totalorder %v1697_v47, 2 }
  0xa0   : > { %3054 = vst [vmem:[#allocation11_spill] sm:$0xff] %v2352_v57  ;;  %3055 = vst [vmem:[#allocation13_spill] sm:$0xff] %v2355_v7  ;;  %v2370_v44 = vsub.f32 %v3062_v23, %v3061_v3  ;;  %v2377_v7 = vadd.f32 %v605_v42, %v3065_v21  ;;  %v3067_v57 = vld [vmem:[#allocation63_spill] sm:$0xff]  ;;  %v3074_v59 = vld [vmem:[#allocation40_spill] sm:$0xff]  ;;  %v644_v42 = vmul.f32 1.442695, %v2349_v35  ;;  %1229 = vpow2.f32 %v642_v11 }
  0xa1   : > { %3059 = vst [vmem:[#allocation53_spill] sm:$0xff] %v2363_v61  ;;  %3060 = vst [vmem:[#allocation25_spill] sm:$0xff] %v2366_v27  ;;  %v2381_v15 = vsub.f32 %v3068_v13, %v3067_v57  ;;  %v2385_v27 = vadd.f32 %v1218_v36, %v3069_v16  ;;  %v3071_v23 = vld [vmem:[#allocation23_spill] sm:$0xff]  ;;  %v2392_v45 = vsub.f32 %v3074_v59, %v3073_v10  ;;  %v3076_v21 = vld [vmem:[#allocation42_spill] sm:$0xff]  ;;  %v646_v36 = vmul.f32 1.442695, %v2359_v41 }
  0xa2   : > { %3064 = vst [vmem:[#allocation14_spill] sm:$0xff] %v2374_v8  ;;  %3066 = vst [vmem:[#allocation57_spill] sm:$0xff] %v2377_v7  ;;  %v2388_v61 = vadd.f32 %v1220_v52, %v3071_v23  ;;  %v2397_v7 = vsub.f32 %v3076_v21, %v3075_v24  ;;  %v3077_v13 = vld [vmem:[#allocation70_spill] sm:$0xff]  ;;  %v3078_v8 = vld [vmem:[#allocation43_spill] sm:$0xff]  ;;  %v648_v28 = vmul.f32 1.442695, %v2370_v44  ;;  %1231 = vpow2.f32 %v644_v42 }
  0xa3   : > { %3070 = vst [vmem:[#allocation27_spill] sm:$0xff] %v2385_v27  ;;  %v2401_v37 = vsub.f32 %v3078_v8, %v3077_v13  ;;  %v3079_v16 = vld [vmem:[#allocation71_spill] sm:$0xff]  ;;  %v3080_v52 = vld [vmem:[#allocation46_spill] sm:$0xff]  ;;  %v3083_v21 = vld [vmem:[#allocation73_spill] sm:$0xff]  ;;  %v650_v26 = vmul.f32 1.442695, %v2381_v15  ;;  %1233 = vpow2.f32 %v646_v36 }
  0xa4   : > { %3072 = vst [vmem:[#allocation17_spill] sm:$0xff] %v2388_v61  ;;  %v2406_v23 = vsub.f32 %v3080_v52, %v3079_v16  ;;  %v3081_v61 = vld [vmem:[#allocation72_spill] sm:$0xff]  ;;  %v3082_v59 = vld [vmem:[#allocation47_spill] sm:$0xff]  ;;  %v3084_v43 = vld [vmem:[#allocation50_spill] sm:$0xff]  ;;  %v652_v33 = vmul.f32 1.442695, %v2392_v45  ;;  %1235 = vpow2.f32 %v648_v28 }
  0xa5   : > { %v2410_v27 = vsub.f32 %v3082_v59, %v3081_v61  ;;  %v2415_v17 = vsub.f32 %v3084_v43, %v3083_v21  ;;  %v3085_v8 = vld [vmem:[#allocation74_spill] sm:$0xff]  ;;  %v3086_v12 = vld [vmem:[#allocation51_spill] sm:$0xff]  ;;  %v3090_v59 = vld [vmem:[#allocation76_spill] sm:$0xff]  ;;  %v654_v11 = vmul.f32 1.442695, %v2397_v7  ;;  %1237 = vpow2.f32 %v650_v26 }
  0xa6   : > { %v2419_v6 = vsub.f32 %v3086_v12, %v3085_v8  ;;  %v3087_v52 = vld [vmem:[#allocation75_spill] sm:$0xff]  ;;  %v3088_v29 = vld [vmem:[#allocation54_spill] sm:$0xff]  ;;  %v3093_v43 = vld [vmem:[#allocation24_spill] sm:$0xff]  ;;  %1239 = vpow2.f32 %v652_v33  ;;  %vm693_vm7 = vcmp.eq.s32.totalorder %v1699_v48, 2  ;;  %vm694_vm8 = vcmp.eq.s32.totalorder %v1718_v55, 2 }
  0xa7   : > { %v2424_v25 = vsub.f32 %v3088_v29, %v3087_v52  ;;  %v3091_v20 = vld [vmem:[#allocation55_spill] sm:$0xff]  ;;  %v2432_v19 = vadd.f32 %v1222_v60, %v3093_v43  ;;  %v3095_v4 = vld [vmem:[#allocation26_spill] sm:$0xff]  ;;  %v656_v29 = vmul.f32 1.442695, %v2401_v37  ;;  %v3097_v14 = vld [vmem:[#allocation28_spill] sm:$0xff]  ;;  %1241 = vpow2.f32 %v654_v11 }
  0xa8   : > { %v2428_v34 = vsub.f32 %v3091_v20, %v3090_v59  ;;  %v2435_v12 = vadd.f32 %v1224_v31, %v3095_v4  ;;  %v2441_v30 = vsub.f32 %v3097_v14, %v1815_v53  ;;  %v3099_v20 = vld [vmem:[#allocation33_spill] sm:$0xff]  ;;  %v658_v60 = vmul.f32 1.442695, %v2406_v23  ;;  %v3101_v53 = vld [vmem:[#allocation12_spill] sm:$0xff]  ;;  %v3103_v33 = vld [vmem:[#allocation38_spill] sm:$0xff] }
  0xa9   : > { %3089 = vst [vmem:[#allocation60_spill] sm:$0xff] %v2424_v25  ;;  %3094 = vst [vmem:[#allocation20_spill] sm:$0xff] %v2432_v19  ;;  %v2445_v42 = vsub.f32 %v3099_v20, %v3037_v50  ;;  %v660_v4 = vmul.f32 1.442695, %v2410_v27  ;;  %v662_v31 = vmul.f32 1.442695, %v2415_v17  ;;  %1243 = vpow2.f32 %v656_v29  ;;  %v1226_v50 = vpop.eup %1225 }
  0xaa   : > { %3092 = vst [vmem:[#allocation32_spill] sm:$0xff] %v2428_v34  ;;  %3096 = vst [vmem:[#allocation18_spill] sm:$0xff] %v2435_v12  ;;  %v664_v28 = vmul.f32 1.442695, %v2419_v6  ;;  %v666_v36 = vmul.f32 1.442695, %v2424_v25  ;;  %v2462_v26 = vsub.f32 %v3103_v33, %v3044_v51  ;;  %1245 = vpow2.f32 %v658_v60 }
  0xab   : > { %3098 = vst [vmem:[#allocation63_spill] sm:$0xff] %v2441_v30  ;;  %3100 = vst [vmem:[#allocation37_spill] sm:$0xff] %v2445_v42  ;;  %v2453_v43 = vmul.f32 1.442695, %v2428_v34  ;;  %vm686_vm0 = vcmp.eq.s32.totalorder %v3101_v53, 2  ;;  %v3102_v14 = vld [vmem:[#allocation16_spill] sm:$0xff]  ;;  %v2470_v34 = vpop.eup %1227  ;;  %1247 = vpow2.f32 %v660_v4 }
  0xac   : > { %vm690_vm4 = vcmp.eq.s32.totalorder %v3102_v14, 2  ;;  %3104 = vst [vmem:[#allocation21_spill] sm:$0xff] %v2462_v26  ;;  %v3105_v11 = vld [vmem:[#allocation41_spill] sm:$0xff]  ;;  %v3107_v29 = vld [vmem:[#allocation44_spill] sm:$0xff]  ;;  %v750_v51 = vmul.f32 1.442695, %v2441_v30  ;;  %v2478_v60 = vpop.eup %1229  ;;  %1249 = vpow2.f32 %v662_v31 }
  0xad   : > { %v2468_v20 = vsub.f32 %v3105_v11, %v3051_v63  ;;  %v2475_v25 = vsub.f32 %v3107_v29, %v3056_v5  ;;  %v3109_v33 = vld [vmem:[#allocation48_spill] sm:$0xff]  ;;  %v752_v11 = vmul.f32 1.442695, %v2445_v42  ;;  %v2486_v4 = vpop.eup %1231  ;;  %1251 = vpow2.f32 %v664_v28 }
  0xae   : > { %v2483_v63 = vsub.f32 %v3109_v33, %v3061_v3  ;;  %vm695_vm9 = vcmp.eq.s32.totalorder %v1720_v56, 2  ;;  %vm696_vm10 = vcmp.eq.s32.totalorder %v1740_v0, 2  ;;  %v3111_v5 = vld [vmem:[#allocation52_spill] sm:$0xff]  ;;  %v754_v31 = vmul.f32 1.442695, %v2462_v26  ;;  %v2495_v12 = vpop.eup %1233 }
  0xaf   : > { %3106 = vst [vmem:[#allocation23_spill] sm:$0xff] %v2468_v20  ;;  %3108 = vst [vmem:[#allocation66_spill] sm:$0xff] %v2475_v25  ;;  %v2492_v29 = vsub.f32 %v3111_v5, %v3067_v57  ;;  %1253 = vpow2.f32 %v666_v36  ;;  %vm697_vm11 = vcmp.eq.s32.totalorder %v1742_v1, 2  ;;  %v3113_v3 = vld [vmem:[#allocation56_spill] sm:$0xff]  ;;  %v756_v28 = vmul.f32 1.442695, %v2468_v20  ;;  %v2503_v19 = vpop.eup %1235 }
  0xb0   : > { %3110 = vst [vmem:[#allocation40_spill] sm:$0xff] %v2483_v63  ;;  %v2500_v33 = vsub.f32 %v3113_v3, %v3073_v10  ;;  %vm698_vm12 = vcmp.eq.s32.totalorder %v2990_v54, 2  ;;  %v2509_v57 = vsel %vm686_vm0, %v2310_v18, 0.0  ;;  %v2514_v36 = vsel %vm687_vm1, %v2323_v49, 0.0  ;;  %v2517_v5 = vpop.eup %1237  ;;  %v3115_v18 = vld [vmem:[#allocation58_spill] sm:$0xff] }
  0xb1   : > { %3112 = vst [vmem:[#allocation69_spill] sm:$0xff] %v2492_v29  ;;  %1255 = vpow2.f32 %v750_v51  ;;  %v758_v10 = vmul.f32 1.442695, %v2475_v25  ;;  %vm699_vm13 = vcmp.eq.s32.totalorder %v2991_v9, 2  ;;  %v2523_v3 = vsel %vm688_vm2, %v2336_v62, 0.0  ;;  %v2530_v26 = vpop.eup %1239  ;;  %v3116_v25 = vld [vmem:[#allocation59_spill] sm:$0xff] }
  0xb2   : > { %3114 = vst [vmem:[#allocation42_spill] sm:$0xff] %v2500_v33  ;;  %v2527_v20 = vsub.f32 %v3115_v18, %v3075_v24  ;;  %1257 = vpow2.f32 %v752_v11  ;;  %v760_v49 = vmul.f32 1.442695, %v2483_v63  ;;  %v2535_v51 = vsel %vm689_vm3, %v2349_v35, 0.0  ;;  %v2542_v30 = vpop.eup %1241  ;;  %v3118_v11 = vld [vmem:[#allocation61_spill] sm:$0xff]  ;;  %v3135_v9 = vld [vmem:[#allocation39_spill] sm:$0xff] }
  0xb3   : > { %v2539_v42 = vsub.f32 %v3116_v25, %v3077_v13  ;;  %1259 = vpow2.f32 %v754_v31  ;;  %v762_v62 = vmul.f32 1.442695, %v2492_v29  ;;  %v2547_v24 = vsel %vm690_vm4, %v2359_v41, 0.0  ;;  %v2554_v63 = vpop.eup %1243  ;;  %v3119_v41 = vld [vmem:[#allocation62_spill] sm:$0xff] }
  0xb4   : > { %v2551_v18 = vsub.f32 %v3118_v11, %v3079_v16  ;;  %1261 = vpow2.f32 %v756_v28  ;;  %v764_v35 = vmul.f32 1.442695, %v2500_v33  ;;  %v2559_v25 = vsel %vm691_vm5, %v2370_v44, 0.0  ;;  %v2570_v16 = vpop.eup %1245  ;;  %v3121_v11 = vld [vmem:[#allocation64_spill] sm:$0xff] }
  0xb5   : > { %3117 = vst [vmem:[#allocation70_spill] sm:$0xff] %v2539_v42  ;;  %v2564_v13 = vsel %vm692_vm6, %v2381_v15, 0.0  ;;  %v2568_v31 = vsub.f32 %v3119_v41, %v3081_v61  ;;  %1263 = vpow2.f32 %v758_v10  ;;  %v670_v28 = vadd.f32 %v1226_v50, %v2237_v2  ;;  %v2578_v29 = vpop.eup %1247  ;;  %v3123_v61 = vld [vmem:[#allocation65_spill] sm:$0xff] }
  0xb6   : > { %v2575_v33 = vsub.f32 %v3121_v11, %v3083_v21  ;;  %1265 = vpow2.f32 %v760_v49  ;;  %v766_v44 = vmul.f32 1.442695, %v2527_v20  ;;  %v709_v15 = vsel %vm693_vm7, %v2392_v45, 0.0  ;;  %v2588_v50 = vpop.eup %1249  ;;  %v3125_v49 = vld [vmem:[#allocation67_spill] sm:$0xff] }
  0xb7   : > { %3120 = vst [vmem:[#allocation43_spill] sm:$0xff] %v2568_v31  ;;  %v2585_v10 = vsub.f32 %v3123_v61, %v3085_v8  ;;  %1267 = vpow2.f32 %v762_v62  ;;  %v768_v2 = vmul.f32 1.442695, %v2539_v42  ;;  %v710_v21 = vsel %vm694_vm8, %v2397_v7, 0.0  ;;  %v2598_v11 = vpop.eup %1251  ;;  %v3127_v62 = vld [vmem:[#allocation68_spill] sm:$0xff] }
  0xb8   : > { %3122 = vst [vmem:[#allocation71_spill] sm:$0xff] %v2575_v33  ;;  %v2595_v41 = vsub.f32 %v3125_v49, %v3087_v52  ;;  %1269 = vpow2.f32 %v764_v35  ;;  %v770_v45 = vmul.f32 1.442695, %v2551_v18  ;;  %v671_v8 = vadd.f32 %v2470_v34, %v2246_v22 }
  0xb9   : > { %3124 = vst [vmem:[#allocation46_spill] sm:$0xff] %v2585_v10  ;;  %1271 = vpow2.f32 %v2453_v43  ;;  %v2605_v61 = vsub.f32 %v3127_v62, %v3090_v59  ;;  %v772_v7 = vmul.f32 1.442695, %v2568_v31  ;;  %v2608_v42 = vpop.eup %1253  ;;  %v711_v52 = vsel %vm695_vm9, %v2401_v37, 0.0  ;;  %v3129_v62 = vld [vmem:[#allocation31_spill] sm:$0xff] }
  0xba   : > { %3126 = vst [vmem:[#allocation72_spill] sm:$0xff] %v2595_v41  ;;  %v2616_v35 = vsel %vm696_vm10, %v2406_v23, 0.0  ;;  %1273 = vpow2.f32 %v766_v44  ;;  %v774_v22 = vmul.f32 1.442695, %v2575_v33  ;;  %v672_v59 = vadd.f32 %v2478_v60, %v2249_v40  ;;  %v3132_v33 = vld [vmem:[#allocation78_spill] sm:$0xff] }
  0xbb   : > { %3128 = vst [vmem:[#allocation47_spill] sm:$0xff] %v2605_v61  ;;  %v1256_v34 = vpop.eup %1255  ;;  %v2624_v43 = vsel %vm697_vm11, %v2410_v27, 0.0  ;;  %1275 = vpow2.f32 %v768_v2  ;;  %v776_v37 = vmul.f32 1.442695, %v2585_v10  ;;  %v673_v23 = vadd.f32 %v2486_v4, %v2258_v58  ;;  %v3131_v10 = vld [vmem:[#allocation36_spill] sm:$0xff] }
  0xbc   : > { %v1258_v49 = vpop.eup %1257  ;;  %v2632_v44 = vsel %vm698_vm12, %v2415_v17, 0.0  ;;  %1277 = vpow2.f32 %v770_v45  ;;  %v778_v40 = vmul.f32 1.442695, %v2595_v41  ;;  %v674_v27 = vadd.f32 %v2495_v12, %v3129_v62  ;;  %v3133_v12 = vld [vmem:[#allocation79_spill] sm:$0xff] }
  0xbd   : > { %v1260_v60 = vpop.eup %1259  ;;  %v2640_v2 = vsel %vm699_vm13, %v2419_v6, 0.0  ;;  %1279 = vpow2.f32 %v772_v7  ;;  %v780_v58 = vmul.f32 1.442695, %v2605_v61  ;;  %v675_v17 = vadd.f32 %v2503_v19, %v3131_v10  ;;  %v3134_v6 = vld [vmem:[#allocation80_spill] sm:$0xff]  ;;  %v3136_v10 = vld [vmem:[#allocation82_spill] sm:$0xff] }
  0xbe   : > { %3130 = vst [vmem:[#allocation73_spill] sm:$0xff] %v2640_v2  ;;  %v1262_v4 = vpop.eup %1261  ;;  %v2647_v45 = vadd.f32 %v2509_v57, %v3132_v33  ;;  %1281 = vpow2.f32 %v774_v22  ;;  %v782_v41 = vadd.f32 %v1256_v34, %v670_v28  ;;  %v2651_v62 = vadd.f32 %v2514_v36, %v3133_v12  ;;  %v3137_v22 = vld [vmem:[#allocation81_spill] sm:$0xff]  ;;  %v3138_v34 = vld [vmem:[#allocation83_spill] sm:$0xff] }
  0xbf   : > { %v1264_v31 = vpop.eup %1263  ;;  %v2655_v7 = vadd.f32 %v2523_v3, %v3134_v6  ;;  %1283 = vpow2.f32 %v776_v37  ;;  %v783_v61 = vadd.f32 %v1258_v49, %v671_v8  ;;  %v676_v19 = vadd.f32 %v2517_v5, %v3135_v9  ;;  %v3139_v49 = vld [vmem:[#allocation15_spill] sm:$0xff]  ;;  %v3140_v5 = vld [vmem:[#allocation9_spill] sm:$0xff] }
  0xc0   : > { %v1266_v2 = vpop.eup %1265  ;;  %v2661_v33 = vadd.f32 %v2535_v51, %v3136_v10  ;;  %1285 = vpow2.f32 %v778_v40  ;;  %v784_v57 = vadd.f32 %v1260_v60, %v672_v59  ;;  %v677_v36 = vadd.f32 %v2530_v26, %v3137_v22  ;;  %v3141_v60 = vld [vmem:[#allocation45_spill] sm:$0xff] }
  0xc1   : > { %v1268_v28 = vpop.eup %1267  ;;  %v2667_v3 = vadd.f32 %v2547_v24, %v3138_v34  ;;  %1287 = vpow2.f32 %v780_v58  ;;  %v785_v8 = vadd.f32 %v1262_v4, %v673_v23  ;;  %v2671_v9 = vadd.f32 %v2559_v25, %v3139_v49  ;;  %v3142_v12 = vld [vmem:[#allocation29_spill] sm:$0xff]  ;;  %v3143_v4 = vld [vmem:[#allocation19_spill] sm:$0xff]  ;;  %v3144_v25 = vld [vmem:[#allocation10_spill] sm:$0xff] }
  0xc2   : > { %v1270_v37 = vpop.eup %1269  ;;  %v2675_v51 = vadd.f32 %v2564_v13, %v3140_v5  ;;  %v786_v59 = vadd.f32 %v1264_v31, %v674_v27  ;;  %1289 = vlog2.f32 %v782_v41  ;;  %v678_v26 = vadd.f32 %v2542_v30, %v3141_v60  ;;  %v3145_v41 = vld [vmem:[#allocation77_spill] sm:$0xff]  ;;  %v3153_v5 = vld [vmem:[#allocation18_spill] sm:$0xff] }
  0xc3   : > { %v1272_v40 = vpop.eup %1271  ;;  %v2680_v24 = vadd.f32 %v709_v15, %v3142_v12  ;;  %v787_v58 = vadd.f32 %v1266_v2, %v675_v17  ;;  %1291 = vlog2.f32 %v783_v61  ;;  %v2683_v6 = vadd.f32 %v710_v21, %v3143_v4  ;;  %v3146_v15 = vld [vmem:[#allocation53_spill] sm:$0xff]  ;;  %v3147_v2 = vld [vmem:[#allocation14_spill] sm:$0xff]  ;;  %v3148_v17 = vld [vmem:[#allocation27_spill] sm:$0xff] }
  0xc4   : > { %v1274_v23 = vpop.eup %1273  ;;  %v2686_v10 = vadd.f32 %v711_v52, %v3144_v25  ;;  %v788_v13 = vadd.f32 %v1268_v28, %v676_v19  ;;  %1293 = vlog2.f32 %v784_v57  ;;  %v679_v27 = vadd.f32 %v2554_v63, %v3145_v41  ;;  %v3149_v63 = vld [vmem:[#allocation17_spill] sm:$0xff]  ;;  %v3155_v12 = vld [vmem:[#allocation23_spill] sm:$0xff] }
  0xc5   : > { %v1276_v31 = vpop.eup %1275  ;;  %v789_v22 = vadd.f32 %v1270_v37, %v677_v36  ;;  %vm798_vm14 = vcmp.eq.s32.totalorder %v3101_v53, 3  ;;  %1295 = vlog2.f32 %v785_v8  ;;  %v680_v61 = vadd.f32 %v2570_v16, %v3146_v15  ;;  %v3150_v16 = vld [vmem:[#allocation63_spill] sm:$0xff]  ;;  %v3151_v34 = vld [vmem:[#allocation37_spill] sm:$0xff]  ;;  %v3152_v37 = vld [vmem:[#allocation20_spill] sm:$0xff] }
  0xc6   : > { %v1278_v30 = vpop.eup %1277  ;;  %v681_v21 = vadd.f32 %v2578_v29, %v3147_v2  ;;  %vm799_vm15 = vcmp.eq.s32.totalorder %v1659_v32, 3  ;;  %1297 = vlog2.f32 %v786_v59  ;;  %v682_v19 = vadd.f32 %v2588_v50, %v3148_v17 }
  0xc7   : > { %v1280_v52 = vpop.eup %1279  ;;  %v790_v57 = vadd.f32 %v1274_v23, %v678_v26  ;;  %vm800_vm0 = vcmp.eq.s32.totalorder %v1675_v38, 3  ;;  %1299 = vlog2.f32 %v787_v58  ;;  %v683_v28 = vadd.f32 %v2598_v11, %v3149_v63  ;;  %v3154_v11 = vld [vmem:[#allocation21_spill] sm:$0xff] }
  0xc8   : > { %v1282_v53 = vpop.eup %1281  ;;  %vm801_vm1 = vcmp.eq.s32.totalorder %v1677_v39, 3  ;;  %v814_v36 = vsel %vm798_vm14, %v3150_v16, 0.0  ;;  %1301 = vlog2.f32 %v788_v13  ;;  %v791_v32 = vadd.f32 %v1276_v31, %v679_v27 }
  0xc9   : > { %v1284_v29 = vpop.eup %1283  ;;  %vm802_vm2 = vcmp.eq.s32.totalorder %v3102_v14, 3  ;;  %v815_v8 = vsel %vm799_vm15, %v3151_v34, 0.0  ;;  %1303 = vlog2.f32 %v789_v22  ;;  %v684_v49 = vadd.f32 %v2608_v42, %v3152_v37  ;;  %v3156_v42 = vld [vmem:[#allocation66_spill] sm:$0xff] }
  0xca   : > { %v1286_v50 = vpop.eup %1285  ;;  %v685_v59 = vadd.f32 %v1272_v40, %v3153_v5  ;;  %vm803_vm3 = vcmp.eq.s32.totalorder %v1695_v46, 3  ;;  %v816_v39 = vsel %vm800_vm0, %v3154_v11, 0.0  ;;  %v792_v26 = vadd.f32 %v1278_v30, %v680_v61 }
  0xcb   : > { %v1288_v60 = vpop.eup %1287  ;;  %v817_v58 = vsel %vm801_vm1, %v3155_v12, 0.0  ;;  %v830_v23 = vadd.f32 %v814_v36, %v2647_v45  ;;  %1305 = vlog2.f32 %v790_v57  ;;  %vm804_vm4 = vcmp.eq.s32.totalorder %v1697_v47, 3  ;;  %v3157_v45 = vld [vmem:[#allocation40_spill] sm:$0xff] }
  0xcc   : > { %v1290_v4 = vpop.eup %1289  ;;  %vm805_vm5 = vcmp.eq.s32.totalorder %v1699_v48, 3  ;;  %v818_v40 = vsel %vm802_vm2, %v3156_v42, 0.0  ;;  %v831_v25 = vadd.f32 %v815_v8, %v2651_v62  ;;  %v793_v13 = vadd.f32 %v1280_v52, %v681_v21  ;;  %v3158_v52 = vld [vmem:[#allocation34_spill] sm:$0xff] }
  0xcd   : > { %v1292_v38 = vpop.eup %1291  ;;  %v832_v31 = vadd.f32 %v816_v39, %v2655_v7  ;;  %v847_v41 = vmul.f32 0.6931472, %v1290_v4  ;;  %1307 = vlog2.f32 %v791_v32  ;;  %vm806_vm6 = vcmp.eq.s32.totalorder %v1718_v55, 3  ;;  %v3159_v7 = vld [vmem:[#allocation69_spill] sm:$0xff] }
  0xce   : > { %v1294_v27 = vpop.eup %1293  ;;  %v819_v22 = vsel %vm803_vm3, %v3157_v45, 0.0  ;;  %v833_v30 = vadd.f32 %v817_v58, %v2661_v33  ;;  %v849_v15 = vmul.f32 0.6931472, %v1292_v38  ;;  %v794_v61 = vadd.f32 %v1282_v53, %v682_v19  ;;  %v3160_v53 = vld [vmem:[#allocation35_spill] sm:$0xff] }
  0xcf   : > { %v1296_v14 = vpop.eup %1295  ;;  %v851_v2 = vmul.f32 0.6931472, %v1294_v27  ;;  %1309 = vlog2.f32 %v792_v26  ;;  %v878_v62 = vsub.f32 %v847_v41, %v830_v23  ;;  %vm700_vm7 = vcmp.eq.s32.totalorder %v3158_v52, 2 }
  0xd0   : > { %v1298_v21 = vpop.eup %1297  ;;  %v820_v17 = vsel %vm804_vm4, %v3159_v7, 0.0  ;;  %v834_v57 = vadd.f32 %v818_v40, %v2667_v3  ;;  %v853_v63 = vmul.f32 0.6931472, %v1296_v14  ;;  %v879_v46 = vsub.f32 %v849_v15, %v831_v25  ;;  %v3161_v3 = vld [vmem:[#allocation42_spill] sm:$0xff]  ;;  %v3162_v40 = vld [vmem:[#allocation49_spill] sm:$0xff]  ;;  %v3166_v15 = vld [vmem:[#allocation11_spill] sm:$0xff] }
  0xd1   : > { %v1300_v16 = vpop.eup %1299  ;;  %v795_v36 = vadd.f32 %v1284_v29, %v683_v28  ;;  %v855_v33 = vmul.f32 0.6931472, %v1298_v21  ;;  %1311 = vlog2.f32 %v793_v13  ;;  %v880_v32 = vsub.f32 %v851_v2, %v832_v31  ;;  %v3163_v25 = vld [vmem:[#allocation70_spill] sm:$0xff]  ;;  %v3169_v7 = vld [vmem:[#allocation32_spill] sm:$0xff] }
  0xd2   : > { %v1302_v19 = vpop.eup %1301  ;;  %vm701_vm8 = vcmp.eq.s32.totalorder %v3160_v53, 2  ;;  %v835_v34 = vadd.f32 %v819_v22, %v2671_v9  ;;  %v857_v8 = vmul.f32 0.6931472, %v1300_v16  ;;  %v881_v37 = vsub.f32 %v853_v63, %v833_v30  ;;  %v3164_v13 = vld [vmem:[#allocation22_spill] sm:$0xff]  ;;  %v3165_v22 = vld [vmem:[#allocation60_spill] sm:$0xff]  ;;  %v3171_v63 = vld [vmem:[#allocation73_spill] sm:$0xff] }
  0xd3   : > { %v895_v5 = vadd.f32 %v879_v46, %v878_v62  ;;  %v1304_v11 = vpop.eup %1303  ;;  %v796_v47 = vadd.f32 %v1286_v50, %v684_v49  ;;  %vm807_vm9 = vcmp.eq.s32.totalorder %v1720_v56, 3  ;;  %v821_v39 = vsel %vm805_vm5, %v3161_v3, 0.0  ;;  %v3167_v14 = vld [vmem:[#allocation30_spill] sm:$0xff] }
  0xd4   : > { %1313 = vlog2.f32 %v794_v61  ;;  %v836_v28 = vadd.f32 %v820_v17, %v2675_v51  ;;  %v859_v29 = vmul.f32 0.6931472, %v1302_v19  ;;  %v882_v26 = vsub.f32 %v855_v33, %v834_v57  ;;  %v3168_v61 = vld [vmem:[#allocation43_spill] sm:$0xff]  ;;  %v3170_v57 = vld [vmem:[#allocation13_spill] sm:$0xff] }
  0xd5   : > { %v896_v12 = vadd.f32 %v895_v5, %v880_v32  ;;  %v1306_v58 = vpop.eup %1305  ;;  %v797_v23 = vadd.f32 %v1288_v60, %v685_v59  ;;  %vm808_vm10 = vcmp.eq.s32.totalorder %v1740_v0, 3  ;;  %v822_v9 = vsel %vm806_vm6, %v2527_v20, 0.0 }
  0xd6   : > { %1315 = vlog2.f32 %v795_v36  ;;  %v837_v50 = vadd.f32 %v821_v39, %v2680_v24  ;;  %v861_v49 = vmul.f32 0.6931472, %v1304_v11  ;;  %v883_v48 = vsub.f32 %v857_v8, %v835_v34  ;;  %v3173_v34 = vld [vmem:[#allocation25_spill] sm:$0xff] }
  0xd7   : > { %v897_v4 = vadd.f32 %v896_v12, %v881_v37  ;;  %v1308_v42 = vpop.eup %1307  ;;  %v728_v51 = vadd.f32 %v2616_v35, %v3162_v40  ;;  %vm809_vm11 = vcmp.eq.s32.totalorder %v1742_v1, 3  ;;  %v823_v59 = vsel %vm807_vm9, %v3163_v25, 0.0  ;;  %v3174_v37 = vld [vmem:[#allocation46_spill] sm:$0xff] }
  0xd8   : > { %1317 = vlog2.f32 %v796_v47  ;;  %v838_v55 = vadd.f32 %v822_v9, %v2683_v6  ;;  %v863_v20 = vmul.f32 0.6931472, %v1306_v58  ;;  %v884_v60 = vsub.f32 %v859_v29, %v836_v28 }
  0xd9   : > { %v898_v38 = vadd.f32 %v897_v4, %v882_v26  ;;  %v1310_v24 = vpop.eup %1309  ;;  %v729_v31 = vadd.f32 %v2624_v43, %v3164_v13  ;;  %vm810_vm12 = vcmp.eq.s32.totalorder %v2990_v54, 3  ;;  %v824_v35 = vsel %vm808_vm10, %v2551_v18, 0.0  ;;  %v3175_v54 = vld [vmem:[#allocation57_spill] sm:$0xff]  ;;  %v3176_v26 = vld [vmem:[#allocation72_spill] sm:$0xff] }
  0xda   : > { %1319 = vlog2.f32 %v797_v23  ;;  %v839_v56 = vadd.f32 %v823_v59, %v2686_v10  ;;  %v865_v41 = vmul.f32 0.6931472, %v1308_v42  ;;  %v885_v27 = vsub.f32 %v861_v49, %v837_v50  ;;  %v3177_v49 = vld [vmem:[#allocation47_spill] sm:$0xff] }
  0xdb   : > { %v899_v45 = vadd.f32 %v898_v38, %v883_v48  ;;  %v1312_v6 = vpop.eup %1311  ;;  %v716_v30 = vsel %vm700_vm7, %v3165_v22, 0.0  ;;  %v730_v43 = vadd.f32 %v2632_v44, %v3166_v15  ;;  %vm811_vm13 = vcmp.eq.s32.totalorder %v3167_v14, 3  ;;  %v3172_v44 = vld [vmem:[#allocation71_spill] sm:$0xff] }
  0xdc   : > { %v825_v0 = vsel %vm809_vm11, %v3168_v61, 0.0  ;;  %v840_v18 = vadd.f32 %v824_v35, %v728_v51  ;;  %v867_v2 = vmul.f32 0.6931472, %v1310_v24  ;;  %v886_v10 = vsub.f32 %v863_v20, %v838_v55 }
  0xdd   : > { %v900_v62 = vadd.f32 %v899_v45, %v884_v60  ;;  %v717_v17 = vsel %vm701_vm8, %v3169_v7, 0.0  ;;  %v731_v46 = vadd.f32 %v3171_v63, %v3170_v57  ;;  %vm812_vm14 = vcmp.eq.s32.totalorder %v3158_v52, 3 }
  0xde   : > { %v1314_v21 = vpop.eup %1313  ;;  %v826_v16 = vsel %vm810_vm12, %v3172_v44, 0.0  ;;  %v841_v1 = vadd.f32 %v825_v0, %v729_v31  ;;  %v869_v36 = vmul.f32 0.6931472, %v1312_v6  ;;  %v887_v33 = vsub.f32 %v865_v41, %v839_v56 }
  0xdf   : > { %v901_v32 = vadd.f32 %v900_v62, %v885_v27  ;;  %v732_v8 = vadd.f32 %v716_v30, %v3173_v34  ;;  %vm813_vm15 = vcmp.eq.s32.totalorder %v3160_v53, 3  ;;  %v827_v5 = vsel %vm811_vm13, %v3174_v37, 0.0 }
  0xe0   : > { %v1316_v19 = vpop.eup %1315  ;;  %v842_v11 = vadd.f32 %v826_v16, %v730_v43  ;;  %v871_v47 = vmul.f32 0.6931472, %v1314_v21  ;;  %v888_v3 = vsub.f32 %v867_v2, %v840_v18  ;;  %v733_v29 = vadd.f32 %v717_v17, %v3175_v54 }
  0xe1   : > { %v902_v39 = vadd.f32 %v901_v32, %v886_v10  ;;  %v828_v12 = vsel %vm812_vm14, %v3176_v26, 0.0  ;;  %v843_v58 = vadd.f32 %v827_v5, %v731_v46  ;;  %v873_v23 = vmul.f32 0.6931472, %v1316_v19 }
  0xe2   : > { %v1318_v28 = vpop.eup %1317  ;;  %v889_v9 = vsub.f32 %v869_v36, %v841_v1  ;;  %v829_v48 = vsel %vm813_vm15, %v3177_v49, 0.0  ;;  %v844_v4 = vadd.f32 %v828_v12, %v732_v8  ;;  %v890_v40 = vsub.f32 %v871_v47, %v842_v11 }
  0xe3   : > { %v903_v50 = vadd.f32 %v902_v39, %v887_v33  ;;  %v875_v42 = vmul.f32 0.6931472, %v1318_v28  ;;  %v845_v25 = vadd.f32 %v829_v48, %v733_v29  ;;  %v891_v55 = vsub.f32 %v873_v23, %v843_v58 }
  0xe4   : > { %v1320_v53 = vpop.eup %1319  ;;  %vm926_vm0 = vcmask 0  }
  0xe5   : > { %v904_v51 = vadd.f32 %v903_v50, %v888_v3  ;;  %v877_v59 = vmul.f32 0.6931472, %v1320_v53  ;;  %v892_v60 = vsub.f32 %v875_v42, %v844_v4 }
  0xe7   : > { %v905_v20 = vadd.f32 %v904_v51, %v889_v9  ;;  %v893_v38 = vsub.f32 %v877_v59, %v845_v25 }
  0xe9   : > { %v906_v52 = vadd.f32 %v905_v20, %v890_v40 }
  0xeb   : > { %v907_v24 = vadd.f32 %v906_v52, %v891_v55 }
  0xed   : > { %v908_v13 = vadd.f32 %v907_v24, %v892_v60 }
  0xef   : > { %v909_v31 = vadd.f32 %v908_v13, %v893_v38 }
  0xf1   : > { %916 = vadd.xlane.f32.xlu0 %v909_v31 }
 0x17e   : > { %v917_v35 = vpop.xlane.xlu0 %916 }
 0x17f   : > { %v918_v56 = vrot.slane %v917_v35, 4 }
 0x181   : > { %v919_v41 = vadd.f32 %v918_v56, %v917_v35 }
 0x183   : > { %v920_v27 = vrot.slane %v919_v41, 2 }
 0x185   : > { %v921_v45 = vadd.f32 %v920_v27, %v919_v41 }
 0x187   : > { %v922_v6 = vrot.slane %v921_v45, 1 }
 0x189   : > { %v923_v22 = vadd.f32 %v922_v6, %v921_v45 }
 0x18b   : > { %1097 = vpush %v923_v22 }
 0x1bc   : > { %s1098_s26 = spop %1097 }
 0x1bd   : > { %v925_v30 = vstv %s1098_s26 }
 0x1be   : > { %927 = vst.msk [vmem:[%s240_s24] sm:$0x1] %vm926_vm0, %v925_v30 }
 0x1bf PF: > { %s18_s14 = sadd.s32 1, %s1435_s14   ;;  %s3178_s9 = smov %s1419_s10 }
 0x1c0   : > { %p15_p11 = scmp.ge.s32.totalorder %s18_s14, 4   ;;  %s3179_s10 = smov %s1423_s11 }
 0x1c1   : > { %s3180_s11 = smov %s1505_s21  ;;  %s3181_s12 = smov %s1431_s13 }
 0x1c2   : > { %s3182_s13 = smov %s3184_s16  ;;  %17 = sbr.rel (!%p15_p11) target bundleno = 6 (0x6), region = 92 }
 0x1c9   :  { %948 = vsyncpa [#allocation4], 1 }
 0x1ca   :  { %950 = vsyncpa [#allocation4 + $0x1], 1 }
 0x1cb   :  { %951 = vsyncpa [#allocation6], 1 }
 0x1cc   :  { %953 = vsyncpa [#allocation6 + $0x1], 1 }

</bundles_post_ra>
